<compile_context>
chip_gen: v7x
topology: tpu7x:2x2x1
jax: 0.10.0
libtpu: 0.0.40
codegen_flags: <defaults>
</compile_context>

<pallas_src>
import functools
import math

import jax
import jax.numpy as jnp
from jax.experimental import pallas as pl
from jax.experimental.pallas import tpu as pltpu

LN_EPS = 1e-5
MASK_RATIO_TRAIN = 0.15 * 0.8  # ESM-2 token_dropout rescaling constant


# ----------------------------- in-kernel math -------------------------------

def _layernorm(v, w, b):
    mu = jnp.mean(v, axis=-1, keepdims=True)
    var = jnp.mean((v - mu) ** 2, axis=-1, keepdims=True)
    return (v - mu) * jax.lax.rsqrt(var + LN_EPS) * w + b


def _rotate_half(x):
    h = x.shape[-1] // 2
    return jnp.concatenate([-x[:, h:], x[:, :h]], axis=-1)


def _erf(x):
    # Abramowitz & Stegun 7.1.26 polynomial (max abs err ~1.5e-7): elementwise
    # ops only (exp goes to the EUP), lowers cleanly in Mosaic.
    p = 0.3275911
    a1, a2, a3, a4, a5 = (0.254829592, -0.284496736, 1.421413741,
                          -1.453152027, 1.061405429)
    ax = jnp.abs(x)
    t = 1.0 / (1.0 + p * ax)
    poly = ((((a5 * t + a4) * t + a3) * t + a2) * t + a1) * t
    y = 1.0 - poly * jnp.exp(-ax * ax)
    return jnp.where(x >= 0.0, y, -y)


def _gelu_exact(x):
    return 0.5 * x * (1.0 + _erf(x * (1.0 / math.sqrt(2.0))))


# ------------------------------ Pallas kernel --------------------------------

def esm2_stack_kernel(x_ref, ln1w, ln1b, wq, bq, wk, bk, wv, bv, wo, bo,
                      ln2w, ln2b, w1, b1, w2, b2, cos_ref, sin_ref,
                      flnw, flnb, o_ref, x_scr, *, num_heads):
    """Whole ESM-2 encoder stack.  grid = (batch, layer); the activation is
    resident in VMEM scratch across the layer axis, weights stream per layer."""
    layer = pl.program_id(1)
    n_layers = pl.num_programs(1)

    # Load the embedding for this batch row once, at the first layer.
    @pl.when(layer == 0)
    def _():
        x_scr[...] = x_ref[...].astype(jnp.float32)

    x = x_scr[...]                                # (S, D) f32, layer-resident
    S, D = x.shape

    # ---- self-attention block (pre-LN, rotary, deferred-softmax) ----
    xn = _layernorm(x, ln1w[...], ln1b[...])
    xn_bf = xn.astype(jnp.bfloat16)               # bf16 MXU operand, f32 accum
    cos = cos_ref[...]                            # (S, hd)
    sin = sin_ref[...]

    def head_body(h, acc):
        # Head-major weights -> dynamic leading-dim ref reads; no lane slicing.
        qh = jnp.dot(xn_bf, wq[h], preferred_element_type=jnp.float32) + bq[h]
        kh = jnp.dot(xn_bf, wk[h], preferred_element_type=jnp.float32) + bk[h]
        vh = jnp.dot(xn_bf, wv[h], preferred_element_type=jnp.float32) + bv[h]
        # (1/sqrt(hd) softmax scale is folded into wq/bq at init; it commutes
        #  with the rotary rotation.)
        qh = qh * cos + _rotate_half(qh) * sin
        kh = kh * cos + _rotate_half(kh) * sin
        s = jnp.dot(qh, kh.T, preferred_element_type=jnp.float32)   # (S, S)
        s = s - jnp.max(s, axis=-1, keepdims=True)
        p = jnp.exp(s)
        denom = jnp.sum(p, axis=-1, keepdims=True)                  # (S, 1)
        oh = jnp.dot(p, vh, preferred_element_type=jnp.float32)     # (S, hd)
        # Deferred normalization: O(S*hd) multiplies + one EUP reciprocal.
        oh = oh * pl.reciprocal(denom, approx=True)
        # Accumulate this head's contribution to the output projection
        # (equivalent to concat(heads) @ Wo, without the concatenate).
        return acc + jnp.dot(oh.astype(jnp.bfloat16), wo[h],
                             preferred_element_type=jnp.float32)

    attn = jax.lax.fori_loop(0, num_heads, head_body,
                             jnp.zeros((S, D), jnp.float32))
    x1 = x + attn + bo[...]

    # ---- feed-forward block ----
    xn2 = _layernorm(x1, ln2w[...], ln2b[...])
    h1 = jnp.dot(xn2.astype(jnp.bfloat16), w1[...],
                 preferred_element_type=jnp.float32) + b1[...]
    h1 = _gelu_exact(h1)
    ff = jnp.dot(h1.astype(jnp.bfloat16), w2[...],
                 preferred_element_type=jnp.float32) + b2[...]
    x2 = x1 + ff
    x_scr[...] = x2

    # representations[33] == output of emb_layer_norm_after, fused here.
    @pl.when(layer == n_layers - 1)
    def _():
        o_ref[...] = _layernorm(x2, flnw[...], flnb[...]).astype(o_ref.dtype)


# ------------------------------ wrappers --------------------------------------

_WEIGHT_ORDER = ("ln1_w", "ln1_b", "wq", "bq", "wk", "bk", "wv", "bv",
                 "wo", "bo", "ln2_w", "ln2_b", "fc1_w", "fc1_b",
                 "fc2_w", "fc2_b")


def _layer_spec(shape):
    """Stacked (L, ...) parameter: squeeze layer dim, index on the layer id."""
    nd = len(shape)
    return pl.BlockSpec((None,) + tuple(shape[1:]),
                        lambda b, l, _nd=nd: (l,) + (0,) * (_nd - 1))


def _const_spec(shape):
    nd = len(shape)
    return pl.BlockSpec(tuple(shape), lambda b, l, _nd=nd: (0,) * _nd)


def run_esm2_stack(x, params, cos, sin, fln_w, fln_b, num_heads):
    B, S, D = x.shape
    L = params["fc1_w"].shape[0]

    weight_args = [params[k] for k in _WEIGHT_ORDER]
    in_specs = ([pl.BlockSpec((None, S, D), lambda b, l: (b, 0, 0))]
                + [_layer_spec(a.shape) for a in weight_args]
                + [_const_spec(a.shape) for a in (cos, sin, fln_w, fln_b)])

    return pl.pallas_call(
        functools.partial(esm2_stack_kernel, num_heads=num_heads),
        out_shape=jax.ShapeDtypeStruct((B, S, D), jnp.float32),
        grid_spec=pltpu.PrefetchScalarGridSpec(
            num_scalar_prefetch=0,
            grid=(B, L),                       # batch outer, layer axis inner
            in_specs=in_specs,
            out_specs=pl.BlockSpec((None, S, D), lambda b, l: (b, 0, 0)),
            scratch_shapes=[pltpu.VMEM((S, D), jnp.float32)]),
        compiler_params=pltpu.CompilerParams(
            dimension_semantics=("parallel", "arbitrary"),
            vmem_limit_bytes=48 * 1024 * 1024),
    )(x, *weight_args, cos, sin, fln_w, fln_b)


def rotary_tables(seq_len, head_dim):
    inv_freq = 1.0 / (10000.0 ** (jnp.arange(0, head_dim, 2, dtype=jnp.float32)
                                  / head_dim))
    t = jnp.arange(seq_len, dtype=jnp.float32)
    freqs = t[:, None] * inv_freq[None, :]
    emb = jnp.concatenate([freqs, freqs], axis=-1)        # (S, head_dim)
    return jnp.cos(emb), jnp.sin(emb)


def init_params(key, num_layers, d_model, d_ffn, vocab, num_heads):
    hd = d_model // num_heads
    assert d_model % num_heads == 0 and hd % 2 == 0
    k_emb, *ks = jax.random.split(key, 7)

    def w(k, shape):
        return jax.random.normal(k, shape, jnp.float32) * 0.02

    # Fold the ESM-2 token_dropout inference rescale (no <mask> tokens) into
    # the embedding table: removes one (B,S,D) elementwise pass.
    embed = w(k_emb, (vocab, d_model)) * (1.0 - MASK_RATIO_TRAIN)

    attn_scale = hd ** -0.5
    params = dict(
        ln1_w=jnp.ones((num_layers, 1, d_model), jnp.float32),
        ln1_b=jnp.zeros((num_layers, 1, d_model), jnp.float32),
        # 1/sqrt(hd) softmax scale folded into Wq (bq is zero, so no-op there).
        wq=(w(ks[0], (num_layers, num_heads, d_model, hd)) * attn_scale
            ).astype(jnp.bfloat16),
        bq=jnp.zeros((num_layers, num_heads, 1, hd), jnp.float32),
        wk=w(ks[1], (num_layers, num_heads, d_model, hd)).astype(jnp.bfloat16),
        bk=jnp.zeros((num_layers, num_heads, 1, hd), jnp.float32),
        wv=w(ks[2], (num_layers, num_heads, d_model, hd)).astype(jnp.bfloat16),
        bv=jnp.zeros((num_layers, num_heads, 1, hd), jnp.float32),
        wo=w(ks[3], (num_layers, num_heads, hd, d_model)).astype(jnp.bfloat16),
        bo=jnp.zeros((num_layers, 1, d_model), jnp.float32),
        ln2_w=jnp.ones((num_layers, 1, d_model), jnp.float32),
        ln2_b=jnp.zeros((num_layers, 1, d_model), jnp.float32),
        fc1_w=w(ks[4], (num_layers, d_model, d_ffn)).astype(jnp.bfloat16),
        fc1_b=jnp.zeros((num_layers, 1, d_ffn), jnp.float32),
        fc2_w=w(ks[5], (num_layers, d_ffn, d_model)).astype(jnp.bfloat16),
        fc2_b=jnp.zeros((num_layers, 1, d_model), jnp.float32),
    )
    fln_w = jnp.ones((1, d_model), jnp.float32)
    fln_b = jnp.zeros((1, d_model), jnp.float32)
    return embed, params, fln_w, fln_b


def raw_esm2_forward(tokens, embed, params, fln_w, fln_b, num_heads):
    """Equivalent of RawESM2.forward: representations of the last layer."""
    # x.long() -> embedding lookup (gather stays in plain JAX).
    x = jnp.take(embed, tokens.astype(jnp.int32), axis=0)   # (B, S, D) f32
    # TODO(synk): padding-mask handling and the <mask>-token part of ESM-2
    # token_dropout are omitted; inputs are assumed to contain no pad/mask ids.
    S = tokens.shape[1]
    hd = embed.shape[1] // num_heads
    cos, sin = rotary_tables(S, hd)
    return run_esm2_stack(x, params, cos, sin, fln_w, fln_b, num_heads)


if __name__ == "__main__":
    # Scaled-down ESM-2 config (real esm2_t33_650M: D=1280, H=20, F=5120, L=33).
    # D=128 so the hidden dim exactly fills the 128-lane axis.
    B, S = 2, 8
    D, H, F, L, VOCAB = 128, 4, 256, 3, 33

    key = jax.random.PRNGKey(0)
    k_tok, k_par = jax.random.split(key)
    # token ids in the "regular amino acid" range of the ESM alphabet
    tokens = jax.random.randint(k_tok, (B, S), 4, 24, dtype=jnp.int32)

    embed, params, fln_w, fln_b = init_params(k_par, L, D, F, VOCAB, H)
    out = raw_esm2_forward(tokens, embed, params, fln_w, fln_b, H)
    out = jax.block_until_ready(out)

    assert out.shape == (B, S, D), out.shape
    assert out.dtype == jnp.float32
    assert bool(jnp.all(jnp.isfinite(out)))
    print("KERNEL_OK")
</pallas_src>

<mosaic_0001>
module attributes {stable_mosaic.version = 11 : i64} {
  func.func @esm2_stack_kernel(%arg0: i32, %arg1: i32, %arg2: memref<1x8x128xf32, #tpu.memory_space<vmem>>, %arg3: memref<1x1x128xf32, #tpu.memory_space<vmem>>, %arg4: memref<1x1x128xf32, #tpu.memory_space<vmem>>, %arg5: memref<1x4x128x32xbf16, #tpu.memory_space<vmem>>, %arg6: memref<1x4x1x32xf32, #tpu.memory_space<vmem>>, %arg7: memref<1x4x128x32xbf16, #tpu.memory_space<vmem>>, %arg8: memref<1x4x1x32xf32, #tpu.memory_space<vmem>>, %arg9: memref<1x4x128x32xbf16, #tpu.memory_space<vmem>>, %arg10: memref<1x4x1x32xf32, #tpu.memory_space<vmem>>, %arg11: memref<1x4x32x128xbf16, #tpu.memory_space<vmem>>, %arg12: memref<1x1x128xf32, #tpu.memory_space<vmem>>, %arg13: memref<1x1x128xf32, #tpu.memory_space<vmem>>, %arg14: memref<1x1x128xf32, #tpu.memory_space<vmem>>, %arg15: memref<1x128x256xbf16, #tpu.memory_space<vmem>>, %arg16: memref<1x1x256xf32, #tpu.memory_space<vmem>>, %arg17: memref<1x256x128xbf16, #tpu.memory_space<vmem>>, %arg18: memref<1x1x128xf32, #tpu.memory_space<vmem>>, %arg19: memref<8x32xf32, #tpu.memory_space<vmem>>, %arg20: memref<8x32xf32, #tpu.memory_space<vmem>>, %arg21: memref<1x128xf32, #tpu.memory_space<vmem>>, %arg22: memref<1x128xf32, #tpu.memory_space<vmem>>, %arg23: memref<1x8x128xf32, #tpu.memory_space<vmem>>, %arg24: memref<8x128xf32, #tpu.memory_space<vmem>>) attributes {dimension_semantics = [#tpu.dimension_semantics<parallel>, #tpu.dimension_semantics<arbitrary>], iteration_bounds = array<i64: 2, 3>, scalar_prefetch = 0 : i64, scratch_operands = 1 : i64, tpu.core_type = #tpu.core_type<tc>, window_params = [{transform_indices = @transform_0, window_bounds = array<i64: 1, 8, 128>}, {transform_indices = @transform_1, window_bounds = array<i64: 1, 1, 128>}, {transform_indices = @transform_2, window_bounds = array<i64: 1, 1, 128>}, {transform_indices = @transform_3, window_bounds = array<i64: 1, 4, 128, 32>}, {transform_indices = @transform_4, window_bounds = array<i64: 1, 4, 1, 32>}, {transform_indices = @transform_5, window_bounds = array<i64: 1, 4, 128, 32>}, {transform_indices = @transform_6, window_bounds = array<i64: 1, 4, 1, 32>}, {transform_indices = @transform_7, window_bounds = array<i64: 1, 4, 128, 32>}, {transform_indices = @transform_8, window_bounds = array<i64: 1, 4, 1, 32>}, {transform_indices = @transform_9, window_bounds = array<i64: 1, 4, 32, 128>}, {transform_indices = @transform_10, window_bounds = array<i64: 1, 1, 128>}, {transform_indices = @transform_11, window_bounds = array<i64: 1, 1, 128>}, {transform_indices = @transform_12, window_bounds = array<i64: 1, 1, 128>}, {transform_indices = @transform_13, window_bounds = array<i64: 1, 128, 256>}, {transform_indices = @transform_14, window_bounds = array<i64: 1, 1, 256>}, {transform_indices = @transform_15, window_bounds = array<i64: 1, 256, 128>}, {transform_indices = @transform_16, window_bounds = array<i64: 1, 1, 128>}, {pipeline_mode = #tpu.pipeline_mode<synchronous>, transform_indices = @transform_17, window_bounds = array<i64: 8, 32>}, {pipeline_mode = #tpu.pipeline_mode<synchronous>, transform_indices = @transform_18, window_bounds = array<i64: 8, 32>}, {pipeline_mode = #tpu.pipeline_mode<synchronous>, transform_indices = @transform_19, window_bounds = array<i64: 1, 128>}, {pipeline_mode = #tpu.pipeline_mode<synchronous>, transform_indices = @transform_20, window_bounds = array<i64: 1, 128>}, {transform_indices = @transform_21, window_bounds = array<i64: 1, 8, 128>}]} {
    %c0_i32 = arith.constant 0 : i32
    %0 = arith.cmpi eq, %arg1, %c0_i32 : i32
    %1 = arith.extui %0 : i1 to i32
    %c0_i32_0 = arith.constant 0 : i32
    %2 = arith.cmpi ne, %1, %c0_i32_0 : i32
    scf.if %2 {
      %c0_65 = arith.constant 0 : index
      %c0_66 = arith.constant 0 : index
      %c0_67 = arith.constant 0 : index
      %128 = vector.load %arg2[%c0_65, %c0_66, %c0_67] : memref<1x8x128xf32, #tpu.memory_space<vmem>>, vector<1x8x128xf32>
      %129 = vector.shape_cast %128 : vector<1x8x128xf32> to vector<8x128xf32>
      %c0_68 = arith.constant 0 : index
      %c0_69 = arith.constant 0 : index
      %130 = vector.load %arg24[%c0_68, %c0_69] : memref<8x128xf32, #tpu.memory_space<vmem>>, vector<8x128xf32>
      tpu.vector_store %arg24[%c0_68, %c0_69], %129 {strides = array<i32>} : memref<8x128xf32, #tpu.memory_space<vmem>>, vector<8x128xf32>,
    } else {
    }
    %c0 = arith.constant 0 : index
    %c0_1 = arith.constant 0 : index
    %3 = vector.load %arg24[%c0, %c0_1] : memref<8x128xf32, #tpu.memory_space<vmem>>, vector<8x128xf32>
    %c0_2 = arith.constant 0 : index
    %c0_3 = arith.constant 0 : index
    %c0_4 = arith.constant 0 : index
    %4 = vector.load %arg3[%c0_2, %c0_3, %c0_4] : memref<1x1x128xf32, #tpu.memory_space<vmem>>, vector<1x1x128xf32>
    %5 = vector.shape_cast %4 : vector<1x1x128xf32> to vector<1x128xf32>
    %c0_5 = arith.constant 0 : index
    %c0_6 = arith.constant 0 : index
    %c0_7 = arith.constant 0 : index
    %6 = vector.load %arg4[%c0_5, %c0_6, %c0_7] : memref<1x1x128xf32, #tpu.memory_space<vmem>>, vector<1x1x128xf32>
    %7 = vector.shape_cast %6 : vector<1x1x128xf32> to vector<1x128xf32>
    %cst = arith.constant dense<0.000000e+00> : vector<8xf32>
    %8 = vector.multi_reduction <add>, %3, %cst [1] : vector<8x128xf32> to vector<8xf32>
    %9 = vector.shape_cast %8 : vector<8xf32> to vector<8x1xf32>
    %cst_8 = arith.constant 1.280000e+02 : f32
    %10 = vector.broadcast %cst_8 : f32 to vector<8x1xf32>
    %11 = arith.divf %9, %10 : vector<8x1xf32>
    %12 = vector.broadcast %11 : vector<8x1xf32> to vector<8x128xf32>
    %13 = arith.subf %3, %12 : vector<8x128xf32>
    %14 = arith.mulf %13, %13 : vector<8x128xf32>
    %cst_9 = arith.constant dense<0.000000e+00> : vector<8xf32>
    %15 = vector.multi_reduction <add>, %14, %cst_9 [1] : vector<8x128xf32> to vector<8xf32>
    %16 = vector.shape_cast %15 : vector<8xf32> to vector<8x1xf32>
    %cst_10 = arith.constant 1.280000e+02 : f32
    %17 = vector.broadcast %cst_10 : f32 to vector<8x1xf32>
    %18 = arith.divf %16, %17 : vector<8x1xf32>
    %19 = vector.broadcast %11 : vector<8x1xf32> to vector<8x128xf32>
    %20 = arith.subf %3, %19 : vector<8x128xf32>
    %cst_11 = arith.constant 9.99999974E-6 : f32
    %21 = vector.broadcast %cst_11 : f32 to vector<8x1xf32>
    %22 = arith.addf %18, %21 : vector<8x1xf32>
    %23 = math.rsqrt %22 : vector<8x1xf32>
    %24 = vector.broadcast %23 : vector<8x1xf32> to vector<8x128xf32>
    %25 = arith.mulf %20, %24 : vector<8x128xf32>
    %26 = vector.broadcast %5 : vector<1x128xf32> to vector<8x128xf32>
    %27 = arith.mulf %25, %26 : vector<8x128xf32>
    %28 = vector.broadcast %7 : vector<1x128xf32> to vector<8x128xf32>
    %29 = arith.addf %27, %28 : vector<8x128xf32>
    %30 = arith.truncf %29 : vector<8x128xf32> to vector<8x128xbf16>
    %c0_12 = arith.constant 0 : index
    %c0_13 = arith.constant 0 : index
    %31 = vector.load %arg19[%c0_12, %c0_13] : memref<8x32xf32, #tpu.memory_space<vmem>>, vector<8x32xf32>
    %c0_14 = arith.constant 0 : index
    %c0_15 = arith.constant 0 : index
    %32 = vector.load %arg20[%c0_14, %c0_15] : memref<8x32xf32, #tpu.memory_space<vmem>>, vector<8x32xf32>
    %cst_16 = arith.constant 0.000000e+00 : f32
    %33 = vector.broadcast %cst_16 : f32 to vector<8x128xf32>
    %c0_i32_17 = arith.constant 0 : i32
    %c4_i32 = arith.constant 4 : i32
    %34 = arith.addi %c0_i32_17, %c4_i32 : i32
    %c1_i32 = arith.constant 1 : i32
    %35 = scf.for %arg25 = %c0_i32_17 to %34 step %c1_i32 iter_args(%arg26 = %33) -> (vector<8x128xf32>)  : i32 {
      %c0_65 = arith.constant 0 : index
      %128 = arith.index_cast %arg25 : i32 to index
      %c0_66 = arith.constant 0 : index
      %c0_67 = arith.constant 0 : index
      %129 = vector.load %arg5[%c0_65, %128, %c0_66, %c0_67] : memref<1x4x128x32xbf16, #tpu.memory_space<vmem>>, vector<1x1x128x32xbf16>
      %130 = vector.shape_cast %129 : vector<1x1x128x32xbf16> to vector<128x32xbf16>
      %cst_68 = arith.constant dense<0.000000e+00> : vector<8x32xf32>
      %131 = tpu.matmul %30, %130, %cst_68 {dimension_numbers = #tpu.dot_dimension_numbers<[1], [0], [0], [1], [0, 0, 1, 1], [], []>} : vector<8x128xbf16>, vector<128x32xbf16>, vector<8x32xf32> -> vector<8x32xf32>
      %c0_69 = arith.constant 0 : index
      %132 = arith.index_cast %arg25 : i32 to index
      %c0_70 = arith.constant 0 : index
      %c0_71 = arith.constant 0 : index
      %133 = vector.load %arg6[%c0_69, %132, %c0_70, %c0_71] : memref<1x4x1x32xf32, #tpu.memory_space<vmem>>, vector<1x1x1x32xf32>
      %134 = vector.shape_cast %133 : vector<1x1x1x32xf32> to vector<1x32xf32>
      %135 = vector.broadcast %134 : vector<1x32xf32> to vector<8x32xf32>
      %136 = arith.addf %131, %135 : vector<8x32xf32>
      %c0_72 = arith.constant 0 : index
      %137 = arith.index_cast %arg25 : i32 to index
      %c0_73 = arith.constant 0 : index
      %c0_74 = arith.constant 0 : index
      %138 = vector.load %arg7[%c0_72, %137, %c0_73, %c0_74] : memref<1x4x128x32xbf16, #tpu.memory_space<vmem>>, vector<1x1x128x32xbf16>
      %139 = vector.shape_cast %138 : vector<1x1x128x32xbf16> to vector<128x32xbf16>
      %cst_75 = arith.constant dense<0.000000e+00> : vector<8x32xf32>
      %140 = tpu.matmul %30, %139, %cst_75 {dimension_numbers = #tpu.dot_dimension_numbers<[1], [0], [0], [1], [0, 0, 1, 1], [], []>} : vector<8x128xbf16>, vector<128x32xbf16>, vector<8x32xf32> -> vector<8x32xf32>
      %c0_76 = arith.constant 0 : index
      %141 = arith.index_cast %arg25 : i32 to index
      %c0_77 = arith.constant 0 : index
      %c0_78 = arith.constant 0 : index
      %142 = vector.load %arg8[%c0_76, %141, %c0_77, %c0_78] : memref<1x4x1x32xf32, #tpu.memory_space<vmem>>, vector<1x1x1x32xf32>
      %143 = vector.shape_cast %142 : vector<1x1x1x32xf32> to vector<1x32xf32>
      %144 = vector.broadcast %143 : vector<1x32xf32> to vector<8x32xf32>
      %145 = arith.addf %140, %144 : vector<8x32xf32>
      %c0_79 = arith.constant 0 : index
      %146 = arith.index_cast %arg25 : i32 to index
      %c0_80 = arith.constant 0 : index
      %c0_81 = arith.constant 0 : index
      %147 = vector.load %arg9[%c0_79, %146, %c0_80, %c0_81] : memref<1x4x128x32xbf16, #tpu.memory_space<vmem>>, vector<1x1x128x32xbf16>
      %148 = vector.shape_cast %147 : vector<1x1x128x32xbf16> to vector<128x32xbf16>
      %cst_82 = arith.constant dense<0.000000e+00> : vector<8x32xf32>
      %149 = tpu.matmul %30, %148, %cst_82 {dimension_numbers = #tpu.dot_dimension_numbers<[1], [0], [0], [1], [0, 0, 1, 1], [], []>} : vector<8x128xbf16>, vector<128x32xbf16>, vector<8x32xf32> -> vector<8x32xf32>
      %c0_83 = arith.constant 0 : index
      %150 = arith.index_cast %arg25 : i32 to index
      %c0_84 = arith.constant 0 : index
      %c0_85 = arith.constant 0 : index
      %151 = vector.load %arg10[%c0_83, %150, %c0_84, %c0_85] : memref<1x4x1x32xf32, #tpu.memory_space<vmem>>, vector<1x1x1x32xf32>
      %152 = vector.shape_cast %151 : vector<1x1x1x32xf32> to vector<1x32xf32>
      %153 = vector.broadcast %152 : vector<1x32xf32> to vector<8x32xf32>
      %154 = arith.addf %149, %153 : vector<8x32xf32>
      %155 = arith.mulf %136, %31 : vector<8x32xf32>
      %156 = vector.extract_strided_slice %136 {offsets = [0, 16], sizes = [8, 16], strides = [1, 1]} : vector<8x32xf32> to vector<8x16xf32>
      %cst_86 = arith.constant 0.000000e+00 : f32
      %157 = vector.broadcast %cst_86 : f32 to vector<8x16xf32>
      %158 = arith.subf %157, %156 : vector<8x16xf32>
      %159 = vector.extract_strided_slice %136 {offsets = [0, 0], sizes = [8, 16], strides = [1, 1]} : vector<8x32xf32> to vector<8x16xf32>
      %160 = tpu.concatenate %158, %159 in 1 : vector<8x16xf32>, vector<8x16xf32> -> vector<8x32xf32>
      %161 = arith.mulf %160, %32 : vector<8x32xf32>
      %162 = arith.addf %155, %161 : vector<8x32xf32>
      %163 = arith.mulf %145, %31 : vector<8x32xf32>
      %164 = vector.extract_strided_slice %145 {offsets = [0, 16], sizes = [8, 16], strides = [1, 1]} : vector<8x32xf32> to vector<8x16xf32>
      %cst_87 = arith.constant 0.000000e+00 : f32
      %165 = vector.broadcast %cst_87 : f32 to vector<8x16xf32>
      %166 = arith.subf %165, %164 : vector<8x16xf32>
      %167 = vector.extract_strided_slice %145 {offsets = [0, 0], sizes = [8, 16], strides = [1, 1]} : vector<8x32xf32> to vector<8x16xf32>
      %168 = tpu.concatenate %166, %167 in 1 : vector<8x16xf32>, vector<8x16xf32> -> vector<8x32xf32>
      %169 = arith.mulf %168, %32 : vector<8x32xf32>
      %170 = arith.addf %163, %169 : vector<8x32xf32>
      %171 = tpu.transpose %170, [1, 0] : vector<8x32xf32> -> vector<32x8xf32>
      %cst_88 = arith.constant dense<0.000000e+00> : vector<8x8xf32>
      %172 = tpu.matmul %162, %171, %cst_88 {dimension_numbers = #tpu.dot_dimension_numbers<[1], [0], [0], [1], [0, 0, 1, 1], [], []>} : vector<8x32xf32>, vector<32x8xf32>, vector<8x8xf32> -> vector<8x8xf32>
      %cst_89 = arith.constant dense<0xFF800000> : vector<8xf32>
      %173 = vector.multi_reduction <maximumf>, %172, %cst_89 [1] : vector<8x8xf32> to vector<8xf32>
      %174 = vector.shape_cast %173 : vector<8xf32> to vector<8x1xf32>
      %175 = vector.broadcast %174 : vector<8x1xf32> to vector<8x8xf32>
      %176 = arith.subf %172, %175 : vector<8x8xf32>
      %177 = math.exp %176 : vector<8x8xf32>
      %cst_90 = arith.constant dense<0.000000e+00> : vector<8xf32>
      %178 = vector.multi_reduction <add>, %177, %cst_90 [1] : vector<8x8xf32> to vector<8xf32>
      %179 = vector.shape_cast %178 : vector<8xf32> to vector<8x1xf32>
      %cst_91 = arith.constant dense<0.000000e+00> : vector<8x32xf32>
      %180 = tpu.matmul %177, %154, %cst_91 {dimension_numbers = #tpu.dot_dimension_numbers<[1], [0], [0], [1], [0, 0, 1, 1], [], []>} : vector<8x8xf32>, vector<8x32xf32>, vector<8x32xf32> -> vector<8x32xf32>
      %181 = tpu.reciprocal %179 {approx = true} : vector<8x1xf32> -> vector<8x1xf32>
      %182 = vector.broadcast %181 : vector<8x1xf32> to vector<8x32xf32>
      %183 = arith.mulf %180, %182 : vector<8x32xf32>
      %184 = arith.truncf %183 : vector<8x32xf32> to vector<8x32xbf16>
      %c0_92 = arith.constant 0 : index
      %185 = arith.index_cast %arg25 : i32 to index
      %c0_93 = arith.constant 0 : index
      %c0_94 = arith.constant 0 : index
      %186 = vector.load %arg11[%c0_92, %185, %c0_93, %c0_94] : memref<1x4x32x128xbf16, #tpu.memory_space<vmem>>, vector<1x1x32x128xbf16>
      %187 = vector.shape_cast %186 : vector<1x1x32x128xbf16> to vector<32x128xbf16>
      %cst_95 = arith.constant dense<0.000000e+00> : vector<8x128xf32>
      %188 = tpu.matmul %184, %187, %cst_95 {dimension_numbers = #tpu.dot_dimension_numbers<[1], [0], [0], [1], [0, 0, 1, 1], [], []>} : vector<8x32xbf16>, vector<32x128xbf16>, vector<8x128xf32> -> vector<8x128xf32>
      %189 = arith.addf %arg26, %188 : vector<8x128xf32>
      scf.yield %189 : vector<8x128xf32>
    }
    %c4_i32_18 = arith.constant 4 : i32
    %36 = arith.addf %3, %35 : vector<8x128xf32>
    %c0_19 = arith.constant 0 : index
    %c0_20 = arith.constant 0 : index
    %c0_21 = arith.constant 0 : index
    %37 = vector.load %arg12[%c0_19, %c0_20, %c0_21] : memref<1x1x128xf32, #tpu.memory_space<vmem>>, vector<1x1x128xf32>
    %38 = vector.shape_cast %37 : vector<1x1x128xf32> to vector<1x128xf32>
    %39 = vector.broadcast %38 : vector<1x128xf32> to vector<8x128xf32>
    %40 = arith.addf %36, %39 : vector<8x128xf32>
    %c0_22 = arith.constant 0 : index
    %c0_23 = arith.constant 0 : index
    %c0_24 = arith.constant 0 : index
    %41 = vector.load %arg13[%c0_22, %c0_23, %c0_24] : memref<1x1x128xf32, #tpu.memory_space<vmem>>, vector<1x1x128xf32>
    %42 = vector.shape_cast %41 : vector<1x1x128xf32> to vector<1x128xf32>
    %c0_25 = arith.constant 0 : index
    %c0_26 = arith.constant 0 : index
    %c0_27 = arith.constant 0 : index
    %43 = vector.load %arg14[%c0_25, %c0_26, %c0_27] : memref<1x1x128xf32, #tpu.memory_space<vmem>>, vector<1x1x128xf32>
    %44 = vector.shape_cast %43 : vector<1x1x128xf32> to vector<1x128xf32>
    %cst_28 = arith.constant dense<0.000000e+00> : vector<8xf32>
    %45 = vector.multi_reduction <add>, %40, %cst_28 [1] : vector<8x128xf32> to vector<8xf32>
    %46 = vector.shape_cast %45 : vector<8xf32> to vector<8x1xf32>
    %cst_29 = arith.constant 1.280000e+02 : f32
    %47 = vector.broadcast %cst_29 : f32 to vector<8x1xf32>
    %48 = arith.divf %46, %47 : vector<8x1xf32>
    %49 = vector.broadcast %48 : vector<8x1xf32> to vector<8x128xf32>
    %50 = arith.subf %40, %49 : vector<8x128xf32>
    %51 = arith.mulf %50, %50 : vector<8x128xf32>
    %cst_30 = arith.constant dense<0.000000e+00> : vector<8xf32>
    %52 = vector.multi_reduction <add>, %51, %cst_30 [1] : vector<8x128xf32> to vector<8xf32>
    %53 = vector.shape_cast %52 : vector<8xf32> to vector<8x1xf32>
    %cst_31 = arith.constant 1.280000e+02 : f32
    %54 = vector.broadcast %cst_31 : f32 to vector<8x1xf32>
    %55 = arith.divf %53, %54 : vector<8x1xf32>
    %56 = vector.broadcast %48 : vector<8x1xf32> to vector<8x128xf32>
    %57 = arith.subf %40, %56 : vector<8x128xf32>
    %cst_32 = arith.constant 9.99999974E-6 : f32
    %58 = vector.broadcast %cst_32 : f32 to vector<8x1xf32>
    %59 = arith.addf %55, %58 : vector<8x1xf32>
    %60 = math.rsqrt %59 : vector<8x1xf32>
    %61 = vector.broadcast %60 : vector<8x1xf32> to vector<8x128xf32>
    %62 = arith.mulf %57, %61 : vector<8x128xf32>
    %63 = vector.broadcast %42 : vector<1x128xf32> to vector<8x128xf32>
    %64 = arith.mulf %62, %63 : vector<8x128xf32>
    %65 = vector.broadcast %44 : vector<1x128xf32> to vector<8x128xf32>
    %66 = arith.addf %64, %65 : vector<8x128xf32>
    %67 = arith.truncf %66 : vector<8x128xf32> to vector<8x128xbf16>
    %c0_33 = arith.constant 0 : index
    %c0_34 = arith.constant 0 : index
    %c0_35 = arith.constant 0 : index
    %68 = vector.load %arg15[%c0_33, %c0_34, %c0_35] : memref<1x128x256xbf16, #tpu.memory_space<vmem>>, vector<1x128x256xbf16>
    %69 = vector.shape_cast %68 : vector<1x128x256xbf16> to vector<128x256xbf16>
    %cst_36 = arith.constant dense<0.000000e+00> : vector<8x256xf32>
    %70 = tpu.matmul %67, %69, %cst_36 {dimension_numbers = #tpu.dot_dimension_numbers<[1], [0], [0], [1], [0, 0, 1, 1], [], []>} : vector<8x128xbf16>, vector<128x256xbf16>, vector<8x256xf32> -> vector<8x256xf32>
    %c0_37 = arith.constant 0 : index
    %c0_38 = arith.constant 0 : index
    %c0_39 = arith.constant 0 : index
    %71 = vector.load %arg16[%c0_37, %c0_38, %c0_39] : memref<1x1x256xf32, #tpu.memory_space<vmem>>, vector<1x1x256xf32>
    %72 = vector.shape_cast %71 : vector<1x1x256xf32> to vector<1x256xf32>
    %73 = vector.broadcast %72 : vector<1x256xf32> to vector<8x256xf32>
    %74 = arith.addf %70, %73 : vector<8x256xf32>
    %cst_40 = arith.constant 5.000000e-01 : f32
    %75 = vector.broadcast %cst_40 : f32 to vector<8x256xf32>
    %76 = arith.mulf %75, %74 : vector<8x256xf32>
    %cst_41 = arith.constant 0.707106769 : f32
    %77 = vector.broadcast %cst_41 : f32 to vector<8x256xf32>
    %78 = arith.mulf %74, %77 : vector<8x256xf32>
    %79 = math.absf %78 : vector<8x256xf32>
    %cst_42 = arith.constant 0.327591091 : f32
    %80 = vector.broadcast %cst_42 : f32 to vector<8x256xf32>
    %81 = arith.mulf %80, %79 : vector<8x256xf32>
    %cst_43 = arith.constant 1.000000e+00 : f32
    %82 = vector.broadcast %cst_43 : f32 to vector<8x256xf32>
    %83 = arith.addf %82, %81 : vector<8x256xf32>
    %cst_44 = arith.constant 1.000000e+00 : f32
    %84 = vector.broadcast %cst_44 : f32 to vector<8x256xf32>
    %85 = arith.divf %84, %83 : vector<8x256xf32>
    %cst_45 = arith.constant 1.06140542 : f32
    %86 = vector.broadcast %cst_45 : f32 to vector<8x256xf32>
    %87 = arith.mulf %86, %85 : vector<8x256xf32>
    %cst_46 = arith.constant -1.45315206 : f32
    %88 = vector.broadcast %cst_46 : f32 to vector<8x256xf32>
    %89 = arith.addf %87, %88 : vector<8x256xf32>
    %90 = arith.mulf %89, %85 : vector<8x256xf32>
    %cst_47 = arith.constant 1.42141378 : f32
    %91 = vector.broadcast %cst_47 : f32 to vector<8x256xf32>
    %92 = arith.addf %90, %91 : vector<8x256xf32>
    %93 = arith.mulf %92, %85 : vector<8x256xf32>
    %cst_48 = arith.constant -0.284496725 : f32
    %94 = vector.broadcast %cst_48 : f32 to vector<8x256xf32>
    %95 = arith.addf %93, %94 : vector<8x256xf32>
    %96 = arith.mulf %95, %85 : vector<8x256xf32>
    %cst_49 = arith.constant 0.254829586 : f32
    %97 = vector.broadcast %cst_49 : f32 to vector<8x256xf32>
    %98 = arith.addf %96, %97 : vector<8x256xf32>
    %99 = arith.mulf %98, %85 : vector<8x256xf32>
    %cst_50 = arith.constant 0.000000e+00 : f32
    %100 = vector.broadcast %cst_50 : f32 to vector<8x256xf32>
    %101 = arith.subf %100, %79 : vector<8x256xf32>
    %102 = arith.mulf %101, %79 : vector<8x256xf32>
    %103 = math.exp %102 : vector<8x256xf32>
    %104 = arith.mulf %99, %103 : vector<8x256xf32>
    %cst_51 = arith.constant 1.000000e+00 : f32
    %105 = vector.broadcast %cst_51 : f32 to vector<8x256xf32>
    %106 = arith.subf %105, %104 : vector<8x256xf32>
    %cst_52 = arith.constant 0.000000e+00 : f32
    %107 = vector.broadcast %cst_52 : f32 to vector<8x256xf32>
    %108 = arith.cmpf oge, %78, %107 : vector<8x256xf32>
    %cst_53 = arith.constant 0.000000e+00 : f32
    %109 = vector.broadcast %cst_53 : f32 to vector<8x256xf32>
    %110 = arith.subf %109, %106 : vector<8x256xf32>
    %111 = arith.select %108, %106, %110 : vector<8x256xi1>, vector<8x256xf32>
    %cst_54 = arith.constant 1.000000e+00 : f32
    %112 = vector.broadcast %cst_54 : f32 to vector<8x256xf32>
    %113 = arith.addf %112, %111 : vector<8x256xf32>
    %114 = arith.mulf %76, %113 : vector<8x256xf32>
    %115 = arith.truncf %114 : vector<8x256xf32> to vector<8x256xbf16>
    %c0_55 = arith.constant 0 : index
    %c0_56 = arith.constant 0 : index
    %c0_57 = arith.constant 0 : index
    %116 = vector.load %arg17[%c0_55, %c0_56, %c0_57] : memref<1x256x128xbf16, #tpu.memory_space<vmem>>, vector<1x256x128xbf16>
    %117 = vector.shape_cast %116 : vector<1x256x128xbf16> to vector<256x128xbf16>
    %cst_58 = arith.constant dense<0.000000e+00> : vector<8x128xf32>
    %118 = tpu.matmul %115, %117, %cst_58 {dimension_numbers = #tpu.dot_dimension_numbers<[1], [0], [0], [1], [0, 0, 1, 1], [], []>} : vector<8x256xbf16>, vector<256x128xbf16>, vector<8x128xf32> -> vector<8x128xf32>
    %c0_59 = arith.constant 0 : index
    %c0_60 = arith.constant 0 : index
    %c0_61 = arith.constant 0 : index
    %119 = vector.load %arg18[%c0_59, %c0_60, %c0_61] : memref<1x1x128xf32, #tpu.memory_space<vmem>>, vector<1x1x128xf32>
    %120 = vector.shape_cast %119 : vector<1x1x128xf32> to vector<1x128xf32>
    %121 = vector.broadcast %120 : vector<1x128xf32> to vector<8x128xf32>
    %122 = arith.addf %118, %121 : vector<8x128xf32>
    %123 = arith.addf %40, %122 : vector<8x128xf32>
    %c0_62 = arith.constant 0 : index
    %c0_63 = arith.constant 0 : index
    %124 = vector.load %arg24[%c0_62, %c0_63] : memref<8x128xf32, #tpu.memory_space<vmem>>, vector<8x128xf32>
    tpu.vector_store %arg24[%c0_62, %c0_63], %123 {strides = array<i32>} : memref<8x128xf32, #tpu.memory_space<vmem>>, vector<8x128xf32>,
    %c2_i32 = arith.constant 2 : i32
    %125 = arith.cmpi eq, %arg1, %c2_i32 : i32
    %126 = arith.extui %125 : i1 to i32
    %c0_i32_64 = arith.constant 0 : i32
    %127 = arith.cmpi ne, %126, %c0_i32_64 : i32
    scf.if %127 {
      %c0_65 = arith.constant 0 : index
      %c0_66 = arith.constant 0 : index
      %128 = vector.load %arg21[%c0_65, %c0_66] : memref<1x128xf32, #tpu.memory_space<vmem>>, vector<1x128xf32>
      %c0_67 = arith.constant 0 : index
      %c0_68 = arith.constant 0 : index
      %129 = vector.load %arg22[%c0_67, %c0_68] : memref<1x128xf32, #tpu.memory_space<vmem>>, vector<1x128xf32>
      %cst_69 = arith.constant dense<0.000000e+00> : vector<8xf32>
      %130 = vector.multi_reduction <add>, %123, %cst_69 [1] : vector<8x128xf32> to vector<8xf32>
      %131 = vector.shape_cast %130 : vector<8xf32> to vector<8x1xf32>
      %cst_70 = arith.constant 1.280000e+02 : f32
      %132 = vector.broadcast %cst_70 : f32 to vector<8x1xf32>
      %133 = arith.divf %131, %132 : vector<8x1xf32>
      %134 = vector.broadcast %133 : vector<8x1xf32> to vector<8x128xf32>
      %135 = arith.subf %123, %134 : vector<8x128xf32>
      %136 = arith.mulf %135, %135 : vector<8x128xf32>
      %cst_71 = arith.constant dense<0.000000e+00> : vector<8xf32>
      %137 = vector.multi_reduction <add>, %136, %cst_71 [1] : vector<8x128xf32> to vector<8xf32>
      %138 = vector.shape_cast %137 : vector<8xf32> to vector<8x1xf32>
      %cst_72 = arith.constant 1.280000e+02 : f32
      %139 = vector.broadcast %cst_72 : f32 to vector<8x1xf32>
      %140 = arith.divf %138, %139 : vector<8x1xf32>
      %141 = vector.broadcast %133 : vector<8x1xf32> to vector<8x128xf32>
      %142 = arith.subf %123, %141 : vector<8x128xf32>
      %cst_73 = arith.constant 9.99999974E-6 : f32
      %143 = vector.broadcast %cst_73 : f32 to vector<8x1xf32>
      %144 = arith.addf %140, %143 : vector<8x1xf32>
      %145 = math.rsqrt %144 : vector<8x1xf32>
      %146 = vector.broadcast %145 : vector<8x1xf32> to vector<8x128xf32>
      %147 = arith.mulf %142, %146 : vector<8x128xf32>
      %148 = vector.broadcast %128 : vector<1x128xf32> to vector<8x128xf32>
      %149 = arith.mulf %147, %148 : vector<8x128xf32>
      %150 = vector.broadcast %129 : vector<1x128xf32> to vector<8x128xf32>
      %151 = arith.addf %149, %150 : vector<8x128xf32>
      %c0_74 = arith.constant 0 : index
      %c0_75 = arith.constant 0 : index
      %c0_76 = arith.constant 0 : index
      %152 = vector.load %arg23[%c0_74, %c0_75, %c0_76] : memref<1x8x128xf32, #tpu.memory_space<vmem>>, vector<1x8x128xf32>
      %153 = vector.shape_cast %152 : vector<1x8x128xf32> to vector<8x128xf32>
      %154 = vector.shape_cast %151 : vector<8x128xf32> to vector<1x8x128xf32>
      tpu.vector_store %arg23[%c0_74, %c0_75, %c0_76], %154 {strides = array<i32>} : memref<1x8x128xf32, #tpu.memory_space<vmem>>, vector<1x8x128xf32>,
    } else {
    }
    return
  }
  func.func @transform_0(%arg0: i32, %arg1: i32) -> (i32, i32, i32) {
    %c0_i32 = arith.constant 0 : i32
    %c0_i32_0 = arith.constant 0 : i32
    %c0_i32_1 = arith.constant 0 : i32
    return %arg0, %c0_i32, %c0_i32_0 : i32, i32, i32
  }
  func.func @transform_1(%arg0: i32, %arg1: i32) -> (i32, i32, i32) {
    %c0_i32 = arith.constant 0 : i32
    %c0_i32_0 = arith.constant 0 : i32
    %c0_i32_1 = arith.constant 0 : i32
    return %arg1, %c0_i32, %c0_i32_0 : i32, i32, i32
  }
  func.func @transform_2(%arg0: i32, %arg1: i32) -> (i32, i32, i32) {
    %c0_i32 = arith.constant 0 : i32
    %c0_i32_0 = arith.constant 0 : i32
    %c0_i32_1 = arith.constant 0 : i32
    return %arg1, %c0_i32, %c0_i32_0 : i32, i32, i32
  }
  func.func @transform_3(%arg0: i32, %arg1: i32) -> (i32, i32, i32, i32) {
    %c0_i32 = arith.constant 0 : i32
    %c0_i32_0 = arith.constant 0 : i32
    %c0_i32_1 = arith.constant 0 : i32
    %c0_i32_2 = arith.constant 0 : i32
    return %arg1, %c0_i32, %c0_i32_0, %c0_i32_1 : i32, i32, i32, i32
  }
  func.func @transform_4(%arg0: i32, %arg1: i32) -> (i32, i32, i32, i32) {
    %c0_i32 = arith.constant 0 : i32
    %c0_i32_0 = arith.constant 0 : i32
    %c0_i32_1 = arith.constant 0 : i32
    %c0_i32_2 = arith.constant 0 : i32
    return %arg1, %c0_i32, %c0_i32_0, %c0_i32_1 : i32, i32, i32, i32
  }
  func.func @transform_5(%arg0: i32, %arg1: i32) -> (i32, i32, i32, i32) {
    %c0_i32 = arith.constant 0 : i32
    %c0_i32_0 = arith.constant 0 : i32
    %c0_i32_1 = arith.constant 0 : i32
    %c0_i32_2 = arith.constant 0 : i32
    return %arg1, %c0_i32, %c0_i32_0, %c0_i32_1 : i32, i32, i32, i32
  }
  func.func @transform_6(%arg0: i32, %arg1: i32) -> (i32, i32, i32, i32) {
    %c0_i32 = arith.constant 0 : i32
    %c0_i32_0 = arith.constant 0 : i32
    %c0_i32_1 = arith.constant 0 : i32
    %c0_i32_2 = arith.constant 0 : i32
    return %arg1, %c0_i32, %c0_i32_0, %c0_i32_1 : i32, i32, i32, i32
  }
  func.func @transform_7(%arg0: i32, %arg1: i32) -> (i32, i32, i32, i32) {
    %c0_i32 = arith.constant 0 : i32
    %c0_i32_0 = arith.constant 0 : i32
    %c0_i32_1 = arith.constant 0 : i32
    %c0_i32_2 = arith.constant 0 : i32
    return %arg1, %c0_i32, %c0_i32_0, %c0_i32_1 : i32, i32, i32, i32
  }
  func.func @transform_8(%arg0: i32, %arg1: i32) -> (i32, i32, i32, i32) {
    %c0_i32 = arith.constant 0 : i32
    %c0_i32_0 = arith.constant 0 : i32
    %c0_i32_1 = arith.constant 0 : i32
    %c0_i32_2 = arith.constant 0 : i32
    return %arg1, %c0_i32, %c0_i32_0, %c0_i32_1 : i32, i32, i32, i32
  }
  func.func @transform_9(%arg0: i32, %arg1: i32) -> (i32, i32, i32, i32) {
    %c0_i32 = arith.constant 0 : i32
    %c0_i32_0 = arith.constant 0 : i32
    %c0_i32_1 = arith.constant 0 : i32
    %c0_i32_2 = arith.constant 0 : i32
    return %arg1, %c0_i32, %c0_i32_0, %c0_i32_1 : i32, i32, i32, i32
  }
  func.func @transform_10(%arg0: i32, %arg1: i32) -> (i32, i32, i32) {
    %c0_i32 = arith.constant 0 : i32
    %c0_i32_0 = arith.constant 0 : i32
    %c0_i32_1 = arith.constant 0 : i32
    return %arg1, %c0_i32, %c0_i32_0 : i32, i32, i32
  }
  func.func @transform_11(%arg0: i32, %arg1: i32) -> (i32, i32, i32) {
    %c0_i32 = arith.constant 0 : i32
    %c0_i32_0 = arith.constant 0 : i32
    %c0_i32_1 = arith.constant 0 : i32
    return %arg1, %c0_i32, %c0_i32_0 : i32, i32, i32
  }
  func.func @transform_12(%arg0: i32, %arg1: i32) -> (i32, i32, i32) {
    %c0_i32 = arith.constant 0 : i32
    %c0_i32_0 = arith.constant 0 : i32
    %c0_i32_1 = arith.constant 0 : i32
    return %arg1, %c0_i32, %c0_i32_0 : i32, i32, i32
  }
  func.func @transform_13(%arg0: i32, %arg1: i32) -> (i32, i32, i32) {
    %c0_i32 = arith.constant 0 : i32
    %c0_i32_0 = arith.constant 0 : i32
    %c0_i32_1 = arith.constant 0 : i32
    return %arg1, %c0_i32, %c0_i32_0 : i32, i32, i32
  }
  func.func @transform_14(%arg0: i32, %arg1: i32) -> (i32, i32, i32) {
    %c0_i32 = arith.constant 0 : i32
    %c0_i32_0 = arith.constant 0 : i32
    %c0_i32_1 = arith.constant 0 : i32
    return %arg1, %c0_i32, %c0_i32_0 : i32, i32, i32
  }
  func.func @transform_15(%arg0: i32, %arg1: i32) -> (i32, i32, i32) {
    %c0_i32 = arith.constant 0 : i32
    %c0_i32_0 = arith.constant 0 : i32
    %c0_i32_1 = arith.constant 0 : i32
    return %arg1, %c0_i32, %c0_i32_0 : i32, i32, i32
  }
  func.func @transform_16(%arg0: i32, %arg1: i32) -> (i32, i32, i32) {
    %c0_i32 = arith.constant 0 : i32
    %c0_i32_0 = arith.constant 0 : i32
    %c0_i32_1 = arith.constant 0 : i32
    return %arg1, %c0_i32, %c0_i32_0 : i32, i32, i32
  }
  func.func @transform_17(%arg0: i32, %arg1: i32) -> (i32, i32) {
    %c0_i32 = arith.constant 0 : i32
    %c0_i32_0 = arith.constant 0 : i32
    %c0_i32_1 = arith.constant 0 : i32
    return %c0_i32, %c0_i32_0 : i32, i32
  }
  func.func @transform_18(%arg0: i32, %arg1: i32) -> (i32, i32) {
    %c0_i32 = arith.constant 0 : i32
    %c0_i32_0 = arith.constant 0 : i32
    %c0_i32_1 = arith.constant 0 : i32
    return %c0_i32, %c0_i32_0 : i32, i32
  }
  func.func @transform_19(%arg0: i32, %arg1: i32) -> (i32, i32) {
    %c0_i32 = arith.constant 0 : i32
    %c0_i32_0 = arith.constant 0 : i32
    %c0_i32_1 = arith.constant 0 : i32
    return %c0_i32, %c0_i32_0 : i32, i32
  }
  func.func @transform_20(%arg0: i32, %arg1: i32) -> (i32, i32) {
    %c0_i32 = arith.constant 0 : i32
    %c0_i32_0 = arith.constant 0 : i32
    %c0_i32_1 = arith.constant 0 : i32
    return %c0_i32, %c0_i32_0 : i32, i32
  }
  func.func @transform_21(%arg0: i32, %arg1: i32) -> (i32, i32, i32) {
    %c0_i32 = arith.constant 0 : i32
    %c0_i32_0 = arith.constant 0 : i32
    %c0_i32_1 = arith.constant 0 : i32
    return %arg0, %c0_i32, %c0_i32_0 : i32, i32, i32
  }
}

</mosaic_0001>

<bundles_post_ra>
// kernel: tpu_custom_call.1
= control target key start
LH: loop header
LB: loop body
LE: loop exit
PB: predicated region body
PF: predicated region fallthrough
CT: control target
= control target key end

     0   :  { %s3408_s0 = inlined_call_operand.vmem [shape: f32[2,8,128], index: 0, kind: input, shape index: {}]   ;;  %s3409_s1 = inlined_call_operand.vmem [shape: f32[3,1,128], index: 1, kind: input, shape index: {}]   ;;  %s3410_s2 = inlined_call_operand.vmem [shape: f32[3,1,128], index: 2, kind: input, shape index: {}]   ;;  %s3411_s3 = inlined_call_operand.vmem [shape: bf16[3,4,128,32], index: 3, kind: input, shape index: {}]   ;;  %s3412_s4 = inlined_call_operand.vmem [shape: f32[3,4,1,32], index: 4, kind: input, shape index: {}]   ;;  %s3413_s5 = inlined_call_operand.vmem [shape: bf16[3,4,128,32], index: 5, kind: input, shape index: {}]   ;;  %s3414_s6 = inlined_call_operand.vmem [shape: f32[3,4,1,32], index: 6, kind: input, shape index: {}]   ;;  %s3415_s7 = inlined_call_operand.vmem [shape: bf16[3,4,128,32], index: 7, kind: input, shape index: {}]   ;;  %s3416_s8 = inlined_call_operand.vmem [shape: f32[3,4,1,32], index: 8, kind: input, shape index: {}]   ;;  %s3417_s9 = inlined_call_operand.vmem [shape: bf16[3,4,32,128], index: 9, kind: input, shape index: {}]   ;;  %s3418_s10 = inlined_call_operand.vmem [shape: f32[3,1,128], index: 10, kind: input, shape index: {}]   ;;  %s3419_s11 = inlined_call_operand.vmem [shape: f32[3,1,128], index: 11, kind: input, shape index: {}]   ;;  %s3420_s12 = inlined_call_operand.vmem [shape: f32[3,1,128], index: 12, kind: input, shape index: {}]   ;;  %s3421_s13 = inlined_call_operand.vmem [shape: bf16[3,128,256], index: 13, kind: input, shape index: {}]   ;;  %s3422_s14 = inlined_call_operand.vmem [shape: f32[3,1,256], index: 14, kind: input, shape index: {}]   ;;  %s3423_s15 = inlined_call_operand.vmem [shape: bf16[3,256,128], index: 15, kind: input, shape index: {}]   ;;  %s3424_s16 = inlined_call_operand.vmem [shape: f32[3,1,128], index: 16, kind: input, shape index: {}]   ;;  %s3425_s17 = inlined_call_operand.vmem [shape: f32[8,32], index: 17, kind: input, shape index: {}]   ;;  %s3426_s18 = inlined_call_operand.vmem [shape: f32[8,32], index: 18, kind: input, shape index: {}]   ;;  %s3427_s19 = inlined_call_operand.vmem [shape: f32[1,128], index: 19, kind: input, shape index: {}]   ;;  %s3428_s20 = inlined_call_operand.vmem [shape: f32[1,128], index: 20, kind: input, shape index: {}]   ;;  %s3429_s21 = inlined_call_operand.hbm [shape: f32[2,8,128], index: 21, kind: output, shape index: {}]  }
   0x1   :  { %3445 = sst [smem:[#allocation19_spill]] %s3408_s0 }
   0x2   :  { %3446 = sst [smem:[#allocation20_spill]] %s3409_s1 }
   0x3   :  { %3447 = sst [smem:[#allocation21_spill]] %s3410_s2 }
   0x4   :  { %3448 = sst [smem:[#allocation22_spill]] %s3411_s3 }
   0x5   :  { %3449 = sst [smem:[#allocation23_spill]] %s3412_s4 }
   0x6   :  { %3450 = sst [smem:[#allocation24_spill]] %s3413_s5 }
   0x7   :  { %3451 = sst [smem:[#allocation25_spill]] %s3417_s9 }
   0x8   :  { %3452 = sst [smem:[#allocation26_spill]] %s3420_s12 }
   0x9   :  { %3453 = sst [smem:[#allocation27_spill]] %s3423_s15 }
   0xa   :  { %3454 = sst [smem:[#allocation28_spill]] %s3424_s16 }
   0xb   :  { %3455 = sst [smem:[#allocation29_spill]] %s3425_s17 }
   0xc   :  { %3456 = sst [smem:[#allocation30_spill]] %s3426_s18 }
   0xd   :  { %3457 = sst [smem:[#allocation31_spill]] %s3427_s19 }
   0xe   :  { %3458 = sst [smem:[#allocation32_spill]] %s3428_s20 }
   0xf   :  { %3459 = sst [smem:[#allocation33_spill]] %s3429_s21 }
  0x10   :  { %26 = vsyncpa [#allocation4], 0 }
  0x11   :  { %28 = vsyncpa [#allocation4 + $0x1], 0  ;;  %s2962_s2 = smov 0   ;;  %s2964_s25 = smov 0  }
  0x12   :  { %s2966_s26 = smov 0   ;;  %s2968_s27 = smov 0  }
  0x13   :  { %s2970_s3 = smov 0   ;;  %s2972_s28 = smov 0  }
  0x14   :  { %s2974_s29 = smov 0   ;;  %s2976_s0 = smov 0  }
  0x15 LB: > { %3460 = sst [smem:[#allocation6_spill]] %s2808_s2  ;;  %s2306_s4 = sadd.s32 4294967295, %s2836_s0   ;;  %s2836_s0 = sphi %s2976_s0, %s34_s0   ;;  %s2832_s29 = sphi %s2974_s29, %s3525_s29   ;;  %s2828_s28 = sphi %s2972_s28, %s3524_s28   ;;  %s2824_s3 = sphi %s2970_s3, %s3523_s3   ;;  %s2820_s27 = sphi %s2968_s27, %s3522_s27   ;;  %s2816_s26 = sphi %s2966_s26, %s3521_s26   ;;  %s2812_s25 = sphi %s2964_s25, %s3520_s25   ;;  %s2808_s2 = sphi %s2962_s2, %s3519_s2  }
  0x16   : > { %3461 = sst [smem:[#allocation7_spill]] %s2812_s25  ;;  %s2307_s30 = sadd.s32 4294967294, %s2836_s0  }
  0x17   : > { %3462 = sst [smem:[#allocation8_spill]] %s2816_s26  ;;  %s43_s5 = sadd.s32 1, %s2828_s28 }
  0x18   : > { %3463 = sst [smem:[#allocation9_spill]] %s2820_s27  ;;  %p44_p0 = scmp.ge.s32.totalorder %s43_s5, 3 }
  0x19   : > { %3464 = sst [smem:[#allocation10_spill]] %s2824_s3  ;;  %s46_s22 = sadd.s32 1, %s2832_s29 }
  0x1a   : > { %3465 = sst [smem:[#allocation11_spill]] %s2828_s28  ;;  %p589_p1 = scmp.ne.s32.totalorder %s2816_s26, %s2812_s25 }
  0x1b   : > { %3466 = sst [smem:[#allocation12_spill]] %s2832_s29  ;;  %p590_p2 = scmp.eq.s32.totalorder %s2306_s4, 5 }
  0x1c   : > { %3467 = sst [smem:[#allocation13_spill]] %s2836_s0  ;;  %s3527_s5 = smov (%p44_p0, %s43_s5), 0 }
  0x1d   : > { %3468 = sst [smem:[#allocation14_spill]] %s3527_s5  ;;  %s3529_s22 = smov (!%p44_p0, %s46_s22), %s2832_s29 }
  0x1e   : > { %p3011_p3 = por %p590_p2, %p589_p1  ;;  %p595_p4 = scmp.ne.s32.totalorder %s2812_s25, %s2808_s2 }
  0x1f   : > { %p48_p5 = scmp.ge.s32.totalorder %s3529_s22, 2  ;;  %p596_p6 = scmp.eq.s32.totalorder %s2307_s30, 5 }
  0x20   : > { %s3469_s23 = scalar_select %p3011_p3, 1, 0 }
  0x21   : > { %p2310_p7 = scmp.ge.s32.totalorder %s2836_s0, 1  ;;  %p745_p8 = scmp.lt.s32.totalorder %s2836_s0, 7 }
  0x22   : > { %3470 = sst [smem:[#allocation15_spill]] %s3469_s23  ;;  %s3531_s22 = smov (%p48_p5, %s3529_s22), 0 }
  0x23   : > { %3471 = sst [smem:[#allocation16_spill]] %s3531_s22  ;;  %p3021_p9 = por %p596_p6, %p595_p4 }
  0x24   : > { %p746_p10 = pnand %p2310_p7, %p745_p8  ;;  %s576_s24 = ssub.s32 %s2832_s29, %s3531_s22 }
  0x25   : > { %s3472_s1 = scalar_select %p3021_p9, 1, 0 }
  0x26   : > { %s579_s4 = sadd.s32 1, %s2816_s26  ;;  %p577_p11 = scmp.eq.s32.totalorder %s576_s24, 0 }
  0x27   : > { %3473 = sst [smem:[#allocation17_spill]] %s3472_s1  ;;  %749 = sbr.rel (%p746_p10) target bundleno = 2701 (0xa8d), region = 104 }
  0x28   : > { %s3029_s5 = scalar_select %p577_p11, %s2816_s26, %s579_s4  }
  0x29   : > { %s3436_s30 = sand.u32 (!%p746_p10), 1, %s2812_s25   ;;  %p868_p12 = scmp.lt.s32.totalorder (!%p746_p10), %s2824_s3, 1 }
  0x2a   : > { %3474 = sst [smem:[#allocation18_spill]] %s3029_s5  ;;  %s3035_s28 = sshll.u32 (!%p746_p10), %s3436_s30, 3 }
  0x2b   : > { %p872_p13 = scmp.lt.s32.totalorder (!%p746_p10), %s2820_s27, 2  ;;  %s3475_s29 = sld [smem:[#allocation19_spill]] (!%p746_p10) }
  0x2c   : > { %s3481_s9 = sld [smem:[#allocation25_spill]] (!%p746_p10)  ;;  %s3483_s20 = sld [smem:[#allocation27_spill]] (!%p746_p10) }
  0x2d   : > { %s3484_s17 = sld [smem:[#allocation28_spill]] (!%p746_p10)  ;;  %s3485_s12 = sld [smem:[#allocation9_spill]] (!%p746_p10) }
  0x2e   : > { %s869_s1 = scalar_select %p868_p12, %s2824_s3, 1 }
  0x2f   : > { %s3040_s2 = scalar_select %p872_p13, %s2820_s27, 2 }
  0x30   : > { %s2312_s24 = sshll.u32 %s869_s1, 3 }
  0x31   : > { %s871_s5 = scalar_lea.vmem %s3475_s29, %s2312_s24  ;;  %s3054_s19 = sshll.u32 %s3040_s2, 8 }
  0x32   : > { %s3061_s29 = sshll.u32 %s3040_s2, 2  ;;  %s2417_s30 = sshll.u32 %s3040_s2, 6 }
  0x33   : > { %s3087_s25 = scalar_lea.vmem %s3481_s9, %s2417_s30  ;;  %s2418_s16 = sshll.u32 %s3040_s2, 7 }
  0x34   : > { %s2326_s27 = sshll.u32 %s3040_s2, 1  ;;  %s3106_s15 = scalar_lea.vmem %s3421_s13, %s2418_s16 }
  0x35   : > { %s3111_s3 = scalar_lea.vmem %s3422_s14, %s2326_s27  ;;  %s3116_s18 = scalar_lea.vmem %s3483_s20, %s2418_s16 }
  0x36   : > { %s935_s21 = scalar_lea.vmem %s3484_s17, %s3040_s2  ;;  %s867_s9 = scalar_lea.vmem [#allocation3], %s3035_s28 }
  0x37   : > { %p2329_p0 = scmp.ne.s32.totalorder %s3485_s12, 0 }
  0x38   : > { %v941_v0 = vld [vmem:[%s871_s5] sm:$0xff] (!%p2329_p0) }
  0x39   : > { %940 = sbr.rel (%p2329_p0) target bundleno = 64 (0x40), region = 108  ;;  %942 = vst [vmem:[#allocation2] sm:$0xff] (!%p2329_p0), %v941_v0 }
  0x40 PF: > { %v3124_v1 = vld [vmem:[#allocation2] sm:$0xff]  ;;  %s3486_s26 = sld [smem:[#allocation29_spill]]  ;;  %s3487_s24 = sld [smem:[#allocation30_spill]]  ;;  %v3150_v18 = vmov 0.0  }
  0x41   : > { %946 = vadd.xlane.f32.xlu0 %v3124_v1  ;;  %s3488_s30 = sld [smem:[#allocation20_spill]]  ;;  %s3490_s22 = sld [smem:[#allocation21_spill]] }
  0x42   : > { %s3152_s4 = smov 0  }
  0x46   : > { %v3131_v6 = vld [vmem:[%s3486_s26] sm:$0xff] }
  0x47   : > { %v3136_v7 = vld [vmem:[%s3487_s24] sm:$0xff]  ;;  %s3489_s0 = scalar_lea.vmem %s3488_s30, %s3040_s2  ;;  %s3491_s17 = scalar_lea.vmem %s3490_s22, %s3040_s2 }
  0x48   : > { %v2330_v12 = vld [vmem:[%s3489_s0] ss:$0 sm:$0xff] }
  0x49   : > { %v2331_v14 = vld [vmem:[%s3491_s17] ss:$0 sm:$0xff] }
  0xce   : > { %v947_v2 = vpop.xlane.xlu0 %946 }
  0xcf   : > { %v949_v3 = vmul.f32 0.0078125, %v947_v2 }
  0xd1   : > { %v950_v4 = vsub.f32 %v3124_v1, %v949_v3 }
  0xd3   : > { %v951_v5 = vmul.f32 %v950_v4, %v950_v4 }
  0xd5   : > { %952 = vadd.xlane.f32.xlu0 %v951_v5 }
 0x162   : > { %v953_v8 = vpop.xlane.xlu0 %952 }
 0x163   : > { %v954_v9 = vmul.f32 0.0078125, %v953_v8 }
 0x165   : > { %v955_v10 = vadd.f32 1e-05, %v954_v9 }
 0x167   : > { %2650 = vrsqrt.f32 %v955_v10 }
 0x171   : > { %v2651_v11 = vpop.eup %2650 }
 0x172   : > { %v957_v13 = vmul.f32 %v2651_v11, %v950_v4 }
 0x174   : > { %v964_v15 = vmul.f32 %v2330_v12, %v957_v13 }
 0x176   : > { %v971_v16 = vadd.f32 %v2331_v14, %v964_v15 }
 0x178   : > { %v3148_v17 = vpack.c.bf16 %v971_v16, %v971_v16 }
 0x179 LB: >> { %v2846_v19 = vmov 0.0   ;;  %s2420_s1 = sshll.u32 %s2844_s4, 6  ;;  %vm2847_vm0 = vmmov 0   ;;  %s3492_s5 = sld [smem:[#allocation22_spill]]  ;;  %vm1335_vm1 = vcmask 130048   ;;  %vm1352_vm2 = vcmask 261120   ;;  %s2844_s4 = sphi %s3152_s4, %s980_s4   ;;  %v2840_v18 = vphi %v3150_v18, %v3501_v18  }
 0x17a   : >> { %2480 = vmatprep.subr.bf16.mxu0 %v2846_v19  ;;  %2500 = vmatprep.subr.bf16.mxu1 %v2846_v19  ;;  %s3494_s0 = sld [smem:[#allocation24_spill]]  ;;  %s3496_s26 = scalar_lea.vmem %s3415_s7, %s3054_s19  ;;  %vm1429_vm3 = vcmask 64512  }
 0x17b   : >> { %2496 = vmatprep.mubr.msk.bf16.mxu0 %vm2847_vm0, %v2846_v19  ;;  %2516 = vmatprep.mubr.msk.bf16.mxu1 %vm2847_vm0, %v2846_v19  ;;  %s3201_s12 = scalar_lea.vmem %s3496_s26, %s2420_s1  ;;  %s2848_s22 = smov 112  }
 0x17c   : >> { %v2668_v50 = vld [vmem:[%s3201_s12] sm:$0xff]   ;;  %v2669_v51 = vld [vmem:[%s3201_s12 + $0x8] sm:$0xff]   ;;  %s2849_s17 = smov 16   ;;  %v2670_v52 = vld [vmem:[%s3201_s12 + $0x10] sm:$0xff]  }
 0x17d   : >> { %v2671_v53 = vld [vmem:[%s3201_s12 + $0x18] sm:$0xff]   ;;  %v2672_v54 = vld [vmem:[%s3201_s12 + $0x20] sm:$0xff]   ;;  %v2673_v55 = vld [vmem:[%s3201_s12 + $0x28] sm:$0xff]  }
 0x17e   : >> { %v2674_v56 = vld [vmem:[%s3201_s12 + $0x30] sm:$0xff]   ;;  %v2675_v57 = vld [vmem:[%s3201_s12 + $0x38] sm:$0xff]  }
 0x17f   : >> { %s3493_s24 = scalar_lea.vmem %s3492_s5, %s3054_s19 }
 0x180   : >> { %s3172_s16 = scalar_lea.vmem %s3493_s24, %s2420_s1  ;;  %s3495_s23 = scalar_lea.vmem %s3494_s0, %s3054_s19 }
 0x181   : >> { %v2652_v20 = vld [vmem:[%s3172_s16] sm:$0xff]   ;;  %s3180_s20 = scalar_lea.vmem %s3495_s23, %s2420_s1  ;;  %v2654_v22 = vld [vmem:[%s3172_s16 + $0x8] sm:$0xff]   ;;  %v2656_v24 = vld [vmem:[%s3172_s16 + $0x10] sm:$0xff]   ;;  %s3497_s24 = sld [smem:[#allocation23_spill]] }
 0x182   : >> { %v2653_v21 = vld [vmem:[%s3180_s20] sm:$0xff]   ;;  %2481 = vmatpush3.bf16.msra.mxu0 %v2652_v20  ;;  %v2655_v23 = vld [vmem:[%s3180_s20 + $0x8] sm:$0xff]   ;;  %v2657_v25 = vld [vmem:[%s3180_s20 + $0x10] sm:$0xff]   ;;  %s3499_s23 = scalar_lea.vmem %s3414_s6, %s3061_s29  ;;  %s3500_s1 = scalar_lea.vmem %s3416_s8, %s3061_s29 }
 0x183   : >> { %2501 = vmatpush3.bf16.msra.mxu1 %v2653_v21  ;;  %2482 = vmatprep.subr.bf16.mxu0 %v2846_v19  ;;  %v2658_v26 = vld [vmem:[%s3172_s16 + $0x18] sm:$0xff]   ;;  %v2660_v28 = vld [vmem:[%s3172_s16 + $0x20] sm:$0xff]   ;;  %v2662_v30 = vld [vmem:[%s3172_s16 + $0x28] sm:$0xff]   ;;  %s1229_s5 = scalar_lea.vmem %s3500_s1, %s2844_s4 }
 0x184   : >> { %2502 = vmatprep.subr.bf16.mxu1 %v2846_v19  ;;  %v2659_v27 = vld [vmem:[%s3180_s20 + $0x18] sm:$0xff]   ;;  %v2661_v29 = vld [vmem:[%s3180_s20 + $0x20] sm:$0xff]   ;;  %v2663_v31 = vld [vmem:[%s3180_s20 + $0x28] sm:$0xff]  }
 0x185   : >> { %v2664_v32 = vld [vmem:[%s3172_s16 + $0x30] sm:$0xff]   ;;  %v2666_v34 = vld [vmem:[%s3172_s16 + $0x38] sm:$0xff]   ;;  %v2354_v13 = vld [vmem:[%s1229_s5] ss:$0 sm:$0xff] }
 0x186   : >> { %2483 = vmatpush3.bf16.msra.mxu0 %v2654_v22  ;;  %v2665_v33 = vld [vmem:[%s3180_s20 + $0x30] sm:$0xff]   ;;  %v2667_v35 = vld [vmem:[%s3180_s20 + $0x38] sm:$0xff]   ;;  %s1115_s20 = scalar_lea.vmem %s3499_s23, %s2844_s4 }
 0x187   : >> { %2503 = vmatpush3.bf16.msra.mxu1 %v2655_v23  ;;  %2484 = vmatprep.subr.bf16.mxu0 %v2846_v19  ;;  %s3498_s16 = scalar_lea.vmem %s3497_s24, %s3061_s29  ;;  %v2344_v37 = vld [vmem:[%s1115_s20] ss:$0 sm:$0xff]  ;;  %s2423_s24 = sshll.u32 %s2844_s4, 4 }
 0x188   : >> { %2504 = vmatprep.subr.bf16.mxu1 %v2846_v19  ;;  %s1001_s27 = scalar_lea.vmem %s3498_s16, %s2844_s4  ;;  %s1517_s16 = scalar_lea.vmem %s3087_s25, %s2423_s24 }
 0x189   : >> { %v2334_v36 = vld [vmem:[%s1001_s27] ss:$0 sm:$0xff]  ;;  %s980_s4 = sadd.s32 1, %s2844_s4  }
 0x18a   : >> { %2485 = vmatpush3.bf16.msra.mxu0 %v2656_v24  ;;  %p977_p1 = scmp.ge.s32.totalorder %s980_s4, 4  }
 0x18b   : >> { %2505 = vmatpush3.bf16.msra.mxu1 %v2657_v25  ;;  %2486 = vmatprep.subr.bf16.mxu0 %v2846_v19  ;;  %s3502_s0 = scalar_lea.vmem (%p977_p1), %s3418_s10, %s3040_s2  ;;  %s3503_s25 = scalar_lea.vmem (%p977_p1), %s3419_s11, %s3040_s2 }
 0x18c   : >> { %2506 = vmatprep.subr.bf16.mxu1 %v2846_v19  ;;  %s3504_s23 = sld [smem:[#allocation26_spill]] (%p977_p1) }
 0x18e   : >> { %2487 = vmatpush3.bf16.msra.mxu0 %v2658_v26  ;;  %v2676_v26 = vld [vmem:[%s1517_s16] sm:$0xff]  }
 0x18f   : >> { %2507 = vmatpush3.bf16.msra.mxu1 %v2659_v27  ;;  %2488 = vmatprep.subr.bf16.mxu0 %v2846_v19  ;;  %v2677_v27 = vld [vmem:[%s1517_s16 + $0x8] sm:$0xff]  }
 0x190   : >> { %2508 = vmatprep.subr.bf16.mxu1 %v2846_v19 }
 0x192   : >> { %2489 = vmatpush3.bf16.msra.mxu0 %v2660_v28  ;;  %s3505_s20 = scalar_lea.vmem (%p977_p1), %s3504_s23, %s3040_s2 }
 0x193   : >> { %2509 = vmatpush3.bf16.msra.mxu1 %v2661_v29  ;;  %2490 = vmatprep.subr.bf16.mxu0 %v2846_v19 }
 0x194   : >> { %2510 = vmatprep.subr.bf16.mxu1 %v2846_v19 }
 0x196   : >> { %2491 = vmatpush3.bf16.msra.mxu0 %v2662_v30 }
 0x197   : >> { %2511 = vmatpush3.bf16.msra.mxu1 %v2663_v31  ;;  %2492 = vmatprep.subr.bf16.mxu0 %v2846_v19 }
 0x198   : >> { %2512 = vmatprep.subr.bf16.mxu1 %v2846_v19 }
 0x19a   : >> { %2493 = vmatpush3.bf16.msra.mxu0 %v2664_v32 }
 0x19b   : >> { %2513 = vmatpush3.bf16.msra.mxu1 %v2665_v33  ;;  %2494 = vmatprep.subr.bf16.mxu0 %v2846_v19 }
 0x19c   : >> { %2514 = vmatprep.subr.bf16.mxu1 %v2846_v19 }
 0x19e   : >> { %2495 = vmatpush3.bf16.msra.mxu0 %v2666_v34 }
 0x19f   : >> { %2515 = vmatpush3.bf16.msra.mxu1 %v2667_v35  ;;  %2520 = vmatprep.subr.bf16.mxu0 %v2846_v19 }
 0x1a0   : >> { %2540 = vmatprep.subr.mxu1 %v2846_v19 }
 0x1a1   : >> { %2497 = vmatmul.mubr.bf16.vlgmr.msra.gmra.mrb[0].mxu0 %v3148_v17 }
 0x1a2   : >> { %2517 = vmatmul.mubr.bf16.vlgmr.msra.gmra.mrb[0].mxu1 %v3148_v17  ;;  %2536 = vmatprep.mubr.msk.bf16.mxu0 %vm2847_vm0, %v2846_v19 }
 0x1a3   : >> { %2542 = vmatprep.mubr.msk.f32.mxu1 %vm2847_vm0, %v2846_v19  ;;  %2521 = vmatpush3.bf16.msra.mxu0 %v2668_v50  ;;  %v2697_v50 = vld [vmem:[%s3106_s15 + $0x54] ss:$8 sps:$4 sm:$0xff] (%p977_p1)  }
 0x1a4   : >> { %2522 = vmatprep.subr.bf16.mxu0 %v2846_v19 }
 0x1a7   : >> { %2523 = vmatpush3.bf16.msra.mxu0 %v2669_v51  ;;  %v2850_v51 = vmov (%p977_p1), 0  }
 0x1a8   : >> { %2524 = vmatprep.subr.bf16.mxu0 %v2846_v19 }
 0x1ab   : >> { %2525 = vmatpush3.bf16.msra.mxu0 %v2670_v52  ;;  %v2699_v52 = vld [vmem:[%s3106_s15 + $0x50] ss:$8 sps:$4 sm:$0xff] (%p977_p1)  }
 0x1ac   : >> { %2526 = vmatprep.subr.bf16.mxu0 %v2846_v19 }
 0x1af   : >> { %2527 = vmatpush3.bf16.msra.mxu0 %v2671_v53  ;;  %v2700_v53 = vld [vmem:[%s3106_s15 + $0x64] ss:$8 sps:$4 sm:$0xff] (%p977_p1)  }
 0x1b0   : >> { %2528 = vmatprep.subr.bf16.mxu0 %v2846_v19 }
 0x1b3   : >> { %2529 = vmatpush3.bf16.msra.mxu0 %v2672_v54  ;;  %v2702_v54 = vld [vmem:[%s3106_s15 + $0x60] ss:$8 sps:$4 sm:$0xff] (%p977_p1)  }
 0x1b4   : >> { %2530 = vmatprep.subr.bf16.mxu0 %v2846_v19 }
 0x1b7   : >> { %2531 = vmatpush3.bf16.msra.mxu0 %v2673_v55  ;;  %v2703_v55 = vld [vmem:[%s3106_s15 + $0x74] ss:$8 sps:$4 sm:$0xff] (%p977_p1)  }
 0x1b8   : >> { %2532 = vmatprep.subr.bf16.mxu0 %v2846_v19 }
 0x1bb   : >> { %2533 = vmatpush3.bf16.msra.mxu0 %v2674_v56  ;;  %v2705_v56 = vld [vmem:[%s3106_s15 + $0x70] ss:$8 sps:$4 sm:$0xff] (%p977_p1)  }
 0x1bc   : >> { %2534 = vmatprep.subr.bf16.mxu0 %v2846_v19 }
 0x1bf   : >> { %2535 = vmatpush3.bf16.msra.mxu0 %v2675_v57 }
 0x1c2   : >> { %2537 = vmatmul.mubr.bf16.vlgmr.msra.gmra.mrb[4].mxu0 %v3148_v17 }
 0x1c3   : > { %1755 = vmatprep.mubr.bf16.mxu0 (%p977_p1), %v2850_v51 }
 0x274   : >> { %v1091_v38 = vpop.f32.mrb[0].mxu0 }
 0x275   : >> { %v1092_v39 = vadd.f32 %v2334_v36, %v1091_v38  ;;  %v1205_v40 = vpop.f32.mrb[0].mxu1  ;;  %v2498_v41 = vpop.f32.mrb[1].mxu0 }
 0x276   : >> { %v1206_v42 = vadd.f32 %v2344_v37, %v1205_v40  ;;  %v2518_v43 = vpop.f32.mrb[1].mxu1  ;;  %v1094_v44 = vpop.f32.mrb[2].mxu0  ;;  %v2682_v40 = vld [vmem:[%s3106_s15 + $0x4] ss:$8 sps:$4 sm:$0xff] (%p977_p1)   ;;  %v2684_v41 = vld [vmem:[%s3106_s15] ss:$8 sps:$4 sm:$0xff] (%p977_p1)  }
 0x277   : >> { %v1208_v45 = vpop.f32.mrb[2].mxu1  ;;  %v1326_v46 = vsub.f32 0.0, %v1092_v39  ;;  %v2499_v47 = vpop.f32.mrb[3].mxu0  ;;  %v1325_v5 = vmul.f32 %v1092_v39, %v3131_v6  ;;  %1723 = vmatprep.subr.bf16.mxu0 (%p977_p1), %v2682_v40 }
 0x278   : >> { %v2519_v48 = vpop.f32.mrb[3].mxu1  ;;  %v1340_v49 = vsub.f32 0.0, %v1206_v42  ;;  %v1339_v0 = vmul.f32 %v1206_v42, %v3131_v6  ;;  %v2685_v6 = vld [vmem:[%s3106_s15 + $0x14] ss:$8 sps:$4 sm:$0xff] (%p977_p1)   ;;  %1724 = vmatpush1.bf16.msra.mxu0 (%p977_p1), %v2684_v41  ;;  %v2690_v45 = vld [vmem:[%s3106_s15 + $0x20] ss:$8 sps:$4 sm:$0xff] (%p977_p1)  }
 0x279   : >> { %1328 = vrot.lane.b32.xlu1 %v1326_v46, %s2848_s22  ;;  %1725 = vmatprep.subr.bf16.mxu0 (%p977_p1), %v2685_v6  ;;  %v2691_v46 = vld [vmem:[%s3106_s15 + $0x34] ss:$8 sps:$4 sm:$0xff] (%p977_p1)   ;;  %v2693_v47 = vld [vmem:[%s3106_s15 + $0x30] ss:$8 sps:$4 sm:$0xff] (%p977_p1)   ;;  %v2694_v48 = vld [vmem:[%s3106_s15 + $0x44] ss:$8 sps:$4 sm:$0xff] (%p977_p1)  }
 0x27a   : >> { %1342 = vrot.lane.b32.xlu0 %v1340_v49, %s2848_s22  ;;  %v2696_v49 = vld [vmem:[%s3106_s15 + $0x40] ss:$8 sps:$4 sm:$0xff] (%p977_p1)  }
 0x27d   : >> { %1332 = vrot.lane.b32.xlu1 %v1092_v39, %s2849_s17 }
 0x27e   : >> { %1346 = vrot.lane.b32.xlu0 %v1206_v42, %s2849_s17  ;;  %s3507_s17 = sld [smem:[#allocation9_spill]] (%p977_p1) }
 0x284   : > { %p2407_p2 = scmp.ne.s32.totalorder (%p977_p1), %s3507_s17, 2 }
 0x295   : >> { %v1319_v12 = vpop.f32.mrb[4].mxu0 }
 0x296   : >> { %v2538_v14 = vpop.f32.mrb[5].mxu0  ;;  %v1320_v15 = vadd.f32 %v2354_v13, %v1319_v12  ;;  %v2712_v12 = vld [vmem:[%s3116_s18 + $0x58] sm:$0xff] (%p977_p1)  }
 0x297   : >> { %v1322_v16 = vpop.f32.mrb[6].mxu0  ;;  %v2713_v13 = vld [vmem:[%s3116_s18 + $0x18] sm:$0xff] (%p977_p1)   ;;  %v2714_v14 = vld [vmem:[%s3116_s18 + $0x60] sm:$0xff] (%p977_p1)  }
 0x298   : >> { %v2539_v20 = vpop.f32.mrb[7].mxu0  ;;  %v2716_v16 = vld [vmem:[%s3116_s18 + $0x68] sm:$0xff] (%p977_p1)  }
 0x299   : > { %v2717_v20 = vld [vmem:[%s3116_s18 + $0x28] sm:$0xff] (%p977_p1)  }
 0x2eb   : >> { %v1329_v58 = vpop.permute.xlu1 %1328 }
 0x2ec   : >> { %v1343_v59 = vpop.permute.xlu0 %1342 }
 0x2ef   : >> { %v1333_v60 = vpop.permute.xlu1 %1332 }
 0x2f0   : >> { %v1347_v61 = vpop.permute.xlu0 %1346  ;;  %v1336_v62 = vsel %vm1335_vm1, %v1329_v58, %v1333_v60 }
 0x2f1   : >> { %v1349_v63 = vsel %vm1335_vm1, %v1343_v59, %v1347_v61  ;;  %v1337_v3 = vmul.f32 %v1336_v62, %v3136_v7  ;;  %v2372_v61 = vld [vmem:[%s3503_s25] ss:$0 sm:$0xff] (%p977_p1) }
 0x2f2   : >> { %v1350_v2 = vmul.f32 %v1349_v63, %v3136_v7  ;;  %v2687_v7 = vld [vmem:[%s3106_s15 + $0x10] ss:$8 sps:$4 sm:$0xff] (%p977_p1)   ;;  %v2373_v63 = vld [vmem:[%s3505_s20] ss:$0 sm:$0xff] (%p977_p1) }
 0x2f3   : >> { %v1338_v8 = vadd.f32 %v1337_v3, %v1325_v5  ;;  %1726 = vmatpush1.bf16.msra.mxu0 (%p977_p1), %v2687_v7  ;;  %v2707_v5 = vld [vmem:[%s3116_s18] sm:$0xff] (%p977_p1)  }
 0x2f4   : >> { %v1351_v4 = vadd.f32 %v1350_v2, %v1339_v0 }
 0x2f6   : >> { %2541 = vmatpush3.xpose.msk.msra.mxu1 %vm1352_vm2, %v1351_v4  ;;  %v2706_v4 = vld [vmem:[%s3116_s18 + $0x40] sm:$0xff] (%p977_p1)  }
 0x2f7   : >> { %2545 = vmatprep.subr.mxu1 %v2846_v19 }
 0x2f9   : >> { %2543 = vmatmul.mubr.msk.f32.vlgmr.msra.gmra.mrb[4].mxu1 %vm1352_vm2, %v1338_v8  ;;  %v2708_v8 = vld [vmem:[%s3116_s18 + $0x48] sm:$0xff] (%p977_p1)  }
 0x2fa   : >> { %2547 = vmatprep.mubr.msk.f32.mxu1 %vm2847_vm0, %v2846_v19  ;;  %2546 = vmatpush3.msra.mxu1 %v1320_v15  ;;  %v2715_v15 = vld [vmem:[%s3116_s18 + $0x20] sm:$0xff] (%p977_p1)  }
 0x2fb   : >> { %2550 = vmatprep.subr.bf16.mxu1 %v2846_v19 }
 0x3cc   : >> { %v1425_v9 = vpop.f32.mrb[4].mxu1 }
 0x3cd   : >> { %v2544_v10 = vpop.f32.mrb[5].mxu1  ;;  %v1430_v11 = vsel %vm1429_vm3, %v1425_v9, -inf }
 0x3ce   : >> { %1431 = vmax.xlane.f32.xlu0 %v1430_v11  ;;  %v2710_v10 = vld [vmem:[%s3116_s18 + $0x50] sm:$0xff] (%p977_p1)  }
 0x3cf   : > { %v2711_v11 = vld [vmem:[%s3116_s18 + $0x10] sm:$0xff] (%p977_p1)  }
 0x45b   : >> { %v1432_v21 = vpop.xlane.xlu0 %1431 }
 0x45c   : >> { %v1433_v22 = vsub.f32 %v1425_v9, %v1432_v21  ;;  %v2709_v9 = vld [vmem:[%s3116_s18 + $0x8] sm:$0xff] (%p977_p1)   ;;  %v2718_v21 = vld [vmem:[%s3116_s18 + $0x70] sm:$0xff] (%p977_p1)  }
 0x45e   : >> { %v1434_v23 = vmul.f32 1.442695, %v1433_v22  ;;  %v2719_v22 = vld [vmem:[%s3116_s18 + $0x30] sm:$0xff] (%p977_p1)  }
 0x460   : >> { %2678 = vpow2.f32 %v1434_v23  ;;  %v2720_v23 = vld [vmem:[%s3116_s18 + $0x78] sm:$0xff] (%p977_p1)  }
 0x46a   : >> { %v2679_v24 = vpop.eup %2678 }
 0x46b   : >> { %2548 = vmatmul.mubr.msk.f32.vlgmr.msra.gmra.mrb[6].mxu1 %vm1429_vm3, %v2679_v24  ;;  %v1436_v25 = vsel %vm1429_vm3, %v2679_v24, 0.0  ;;  %v2721_v24 = vld [vmem:[%s3116_s18 + $0x38] sm:$0xff] (%p977_p1)  }
 0x46c   : >> { %1437 = vadd.xlane.f32.xlu1 %v1436_v25  ;;  %2554 = vmatprep.mubr.msk.bf16.mxu1 %vm2847_vm0, %v2846_v19  ;;  %v1633_v25 = vlaneseq (%p977_p1) }
 0x46d   : >> { %2551 = vmatpush3.bf16.msra.mxu1 %v2676_v26 }
 0x46e   : >> { %2552 = vmatprep.subr.bf16.mxu1 %v2846_v19  ;;  %v1634_v26 = vshrl.u32 (%p977_p1), %v1633_v25, 7 }
 0x471   : >> { %2553 = vmatpush3.bf16.msra.mxu1 %v2677_v27  ;;  %v1635_v27 = vsub.s32 (%p977_p1), 0, %v1634_v26 }
 0x472   : > { %2458 = vmatprep.subr.bf16.mxu1 (%p977_p1), %v2706_v4 }
 0x4f9   : >> { %v1438_v28 = vpop.xlane.xlu1 %1437 }
 0x4fa   : >> { %2680 = vrcp.f32 %v1438_v28  ;;  %v1631_v28 = vld [vmem:[%s3111_s3] sm:$0x3] (%p977_p1) }
 0x504   : >> { %v2681_v29 = vpop.eup %2680 }
 0x53e   : >> { %v1508_v30 = vpop.f32.mrb[6].mxu1 }
 0x53f   : >> { %v1513_v31 = vmul.f32 %v2681_v29, %v1508_v30  ;;  %v2549_v32 = vpop.f32.mrb[7].mxu1  ;;  %v1639_v29 = vsub.s32 (%p977_p1), 1, %v1634_v26  ;;  %v1636_v30 = vrot.slane (%p977_p1), %v1631_v28, %v1635_v27 }
 0x541   : >> { %v1514_v33 = vpack.c.bf16 %v1513_v31, %v1513_v31  ;;  %v1640_v31 = vrot.slane (%p977_p1), %v1631_v28, %v1639_v29  ;;  %v2390_v28 = vld [vmem:[%s935_s21] ss:$0 sm:$0xff] (%p977_p1) }
 0x543   : >> { %2555 = vmatmul.mubr.msk.bf16.vlgmr.msra.gmra.mrb[8].mxu1 %vm1352_vm2, %v1514_v33 }
 0x544   : > { %2459 = vmatpush3.bf16.msra.mxu1 (%p977_p1), %v2707_v5 }
 0x545   : > { %2460 = vmatprep.subr.bf16.mxu1 (%p977_p1), %v2708_v8 }
 0x548   : > { %2461 = vmatpush3.bf16.msra.mxu1 (%p977_p1), %v2709_v9 }
 0x549   : > { %2462 = vmatprep.subr.bf16.mxu1 (%p977_p1), %v2710_v10 }
 0x54c   : > { %2463 = vmatpush3.bf16.msra.mxu1 (%p977_p1), %v2711_v11 }
 0x54d   : > { %2464 = vmatprep.subr.bf16.mxu1 (%p977_p1), %v2712_v12 }
 0x550   : > { %2465 = vmatpush3.bf16.msra.mxu1 (%p977_p1), %v2713_v13 }
 0x551   : > { %2466 = vmatprep.subr.bf16.mxu1 (%p977_p1), %v2714_v14 }
 0x554   : > { %2467 = vmatpush3.bf16.msra.mxu1 (%p977_p1), %v2715_v15 }
 0x555   : > { %2468 = vmatprep.subr.bf16.mxu1 (%p977_p1), %v2716_v16 }
 0x558   : > { %2469 = vmatpush3.bf16.msra.mxu1 (%p977_p1), %v2717_v20 }
 0x559   : > { %2470 = vmatprep.subr.bf16.mxu1 (%p977_p1), %v2718_v21 }
 0x55c   : > { %2471 = vmatpush3.bf16.msra.mxu1 (%p977_p1), %v2719_v22 }
 0x55d   : > { %2472 = vmatprep.subr.bf16.mxu1 (%p977_p1), %v2720_v23 }
 0x560   : > { %2473 = vmatpush3.bf16.msra.mxu1 (%p977_p1), %v2721_v24 }
 0x613   : > { %979 = sbr.rel (!%p977_p1) target bundleno = 377 (0x179), region = 209 }
 0x616   : >> { %v1571_v34 = vpop.f32.mrb[8].mxu1 }
 0x617   : >> { %v1577_v35 = vadd.f32 %v2840_v18, %v1571_v34   ;;  %v2556_v36 = vpop.f32.mrb[9].mxu1 }
 0x618   : >> { %v1574_v37 = vpop.f32.mrb[10].mxu1 }
 0x619   : >> { %v2557_v38 = vpop.f32.mrb[11].mxu1  ;;  %v3501_v18 = vmov %v1577_v35  ;;  %v1578_v19 = vadd.f32 (%p977_p1), %v1577_v35, %v3124_v1  ;;  %v2688_v1 = vld [vmem:[%s3106_s15 + $0x24] ss:$8 sps:$4 sm:$0xff] (%p977_p1)  }
 0x61a   : > { %v2371_v18 = vld [vmem:[%s3502_s0] ss:$0 sm:$0xff]  ;;  %1727 = vmatprep.subr.bf16.mxu0 %v2688_v1  ;;  %s3508_s26 = sld [smem:[#allocation31_spill]] (!%p2407_p2)  ;;  %s3509_s5 = sld [smem:[#allocation32_spill]] (!%p2407_p2) }
 0x61b   : > { %v3291_v39 = vadd.f32 %v2371_v18, %v1578_v19  ;;  %1728 = vmatpush1.bf16.msra.mxu0 %v2690_v45 }
 0x61c   : > { %1729 = vmatprep.subr.bf16.mxu0 %v2691_v46 }
 0x61d   : > { %1589 = vadd.xlane.f32.xlu0 %v3291_v39 }
 0x61f   : > { %1730 = vmatpush1.bf16.msra.mxu0 %v2693_v47 }
 0x620   : > { %1731 = vmatprep.subr.bf16.mxu0 %v2694_v48 }
 0x623   : > { %1732 = vmatpush1.bf16.msra.mxu0 %v2696_v49 }
 0x624   : > { %1733 = vmatprep.subr.bf16.mxu0 %v2697_v50 }
 0x627   : > { %1734 = vmatpush1.bf16.msra.mxu0 %v2699_v52 }
 0x628   : > { %1735 = vmatprep.subr.bf16.mxu0 %v2700_v53 }
 0x62b   : > { %1736 = vmatpush1.bf16.msra.mxu0 %v2702_v54 }
 0x62c   : > { %1737 = vmatprep.subr.bf16.mxu0 %v2703_v55 }
 0x62f   : > { %1738 = vmatpush1.bf16.msra.mxu0 %v2705_v56 }
 0x6aa   : > { %v1590_v17 = vpop.xlane.xlu0 %1589 }
 0x6ab   : > { %v1591_v42 = vmul.f32 0.0078125, %v1590_v17 }
 0x6ad   : > { %v1592_v43 = vsub.f32 %v3291_v39, %v1591_v42 }
 0x6af   : > { %v1593_v44 = vmul.f32 %v1592_v43, %v1592_v43 }
 0x6b1   : > { %1594 = vadd.xlane.f32.xlu0 %v1593_v44 }
 0x73e   : > { %v1595_v57 = vpop.xlane.xlu0 %1594 }
 0x73f   : > { %v1596_v58 = vmul.f32 0.0078125, %v1595_v57 }
 0x741   : > { %v1597_v59 = vadd.f32 1e-05, %v1596_v58 }
 0x743   : > { %2722 = vrsqrt.f32 %v1597_v59 }
 0x74d   : > { %v2723_v60 = vpop.eup %2722 }
 0x74e   : > { %v1599_v62 = vmul.f32 %v2723_v60, %v1592_v43 }
 0x750   : > { %v1606_v0 = vmul.f32 %v2372_v61, %v1599_v62 }
 0x752   : > { %v1613_v2 = vadd.f32 %v2373_v63, %v1606_v0 }
 0x754   : > { %v1614_v3 = vpack.c.bf16 %v1613_v2, %v1613_v2 }
 0x756   : > { %1756 = vmatmul.mubr.bf16.vlgmr.msra.gmra.mrb[0].mxu0 %v1614_v3 }
 0x829   : > { %v1757_v32 = vpop.f32.mrb[0].mxu0 }
 0x82a   : > { %v1758_v33 = vadd.f32 %v1757_v32, %v1636_v30  ;;  %v1759_v34 = vpop.f32.mrb[1].mxu0 }
 0x82b   : > { %v1760_v35 = vadd.f32 %v1759_v34, %v1640_v31  ;;  %v1761_v36 = vpop.f32.mrb[2].mxu0 }
 0x82c   : > { %v1766_v37 = vmul.f32 0.70710677, %v1758_v33  ;;  %v1762_v38 = vpop.f32.mrb[3].mxu0  ;;  %v1764_v15 = vmul.f32 0.5, %v1758_v33 }
 0x82d   : > { %v1767_v19 = vmul.f32 0.70710677, %v1760_v35  ;;  %v1765_v21 = vmul.f32 0.5, %v1760_v35 }
 0x82e   : > { %v1768_v18 = vand.u32 2147483647, %v1766_v37  ;;  %vm1808_vm4 = vcmp.ge.f32.partialorder %v1766_v37, 0.0 }
 0x82f   : > { %v1769_v40 = vand.u32 2147483647, %v1767_v19  ;;  %vm1809_vm5 = vcmp.ge.f32.partialorder %v1767_v19, 0.0 }
 0x830   : > { %v1770_v41 = vmul.f32 0.3275911, %v1768_v18  ;;  %v1796_v17 = vsub.f32 0.0, %v1768_v18 }
 0x831   : > { %v1771_v6 = vmul.f32 0.3275911, %v1769_v40  ;;  %v1797_v42 = vsub.f32 0.0, %v1769_v40 }
 0x832   : > { %v1772_v7 = vadd.f32 1.0, %v1770_v41  ;;  %v1798_v44 = vmul.f32 %v1796_v17, %v1768_v18 }
 0x833   : > { %v1773_v1 = vadd.f32 1.0, %v1771_v6  ;;  %v1799_v46 = vmul.f32 %v1797_v42, %v1769_v40 }
 0x834   : > { %2724 = vrcp.f32 %v1772_v7  ;;  %v1800_v50 = vmul.f32 1.442695, %v1798_v44  ;;  %v2409_v7 = vld [vmem:[%s3509_s5] ss:$0 sm:$0xff] (!%p2407_p2) }
 0x835   : > { %2726 = vrcp.f32 %v1773_v1  ;;  %v1802_v52 = vmul.f32 1.442695, %v1799_v46 }
 0x836   : > { %2728 = vpow2.f32 %v1800_v50 }
 0x837   : > { %2730 = vpow2.f32 %v1802_v52 }
 0x83e   : > { %v2725_v43 = vpop.eup %2724 }
 0x83f   : > { %v2727_v45 = vpop.eup %2726  ;;  %v1778_v47 = vmul.f32 1.0614054, %v2725_v43 }
 0x840   : > { %v1779_v48 = vmul.f32 1.0614054, %v2727_v45  ;;  %v2729_v3 = vpop.eup %2728 }
 0x841   : > { %v1780_v49 = vadd.f32 -1.4531521, %v1778_v47  ;;  %v2731_v5 = vpop.eup %2730 }
 0x842   : > { %v1781_v51 = vadd.f32 -1.4531521, %v1779_v48 }
 0x843   : > { %v1782_v53 = vmul.f32 %v2725_v43, %v1780_v49 }
 0x844   : > { %v1783_v54 = vmul.f32 %v2727_v45, %v1781_v51 }
 0x845   : > { %v1784_v55 = vadd.f32 1.4214138, %v1782_v53 }
 0x846   : > { %v1785_v56 = vadd.f32 1.4214138, %v1783_v54 }
 0x847   : > { %v1786_v57 = vmul.f32 %v2725_v43, %v1784_v55 }
 0x848   : > { %v1787_v58 = vmul.f32 %v2727_v45, %v1785_v56 }
 0x849   : > { %v1788_v59 = vadd.f32 -0.28449672, %v1786_v57 }
 0x84a   : > { %v1789_v60 = vadd.f32 -0.28449672, %v1787_v58 }
 0x84b   : > { %v1790_v61 = vmul.f32 %v2725_v43, %v1788_v59 }
 0x84c   : > { %v1791_v62 = vmul.f32 %v2727_v45, %v1789_v60 }
 0x84d   : > { %v1792_v63 = vadd.f32 0.2548296, %v1790_v61 }
 0x84e   : > { %v1793_v0 = vadd.f32 0.2548296, %v1791_v62 }
 0x84f   : > { %v1794_v2 = vmul.f32 %v2725_v43, %v1792_v63 }
 0x850   : > { %v1795_v4 = vmul.f32 %v2727_v45, %v1793_v0 }
 0x851   : > { %v1804_v8 = vmul.f32 %v2729_v3, %v1794_v2 }
 0x852   : > { %v1805_v9 = vmul.f32 %v2731_v5, %v1795_v4 }
 0x853   : > { %v1806_v10 = vsub.f32 1.0, %v1804_v8 }
 0x854   : > { %v1807_v11 = vsub.f32 1.0, %v1805_v9 }
 0x855   : > { %v1810_v12 = vsub.f32 0.0, %v1806_v10 }
 0x856   : > { %v1811_v13 = vsub.f32 0.0, %v1807_v11 }
 0x857   : > { %v1812_v14 = vsel %vm1808_vm4, %v1806_v10, %v1810_v12 }
 0x858   : > { %v1813_v16 = vsel %vm1809_vm5, %v1807_v11, %v1811_v13  ;;  %v1814_v20 = vadd.f32 1.0, %v1812_v14 }
 0x859   : > { %v1815_v22 = vadd.f32 1.0, %v1813_v16 }
 0x85a   : > { %v1816_v23 = vmul.f32 %v1814_v20, %v1764_v15 }
 0x85b   : > { %v1817_v24 = vmul.f32 %v1815_v22, %v1765_v21 }
 0x85c   : > { %v1818_v26 = vpack.c.bf16 %v1816_v23, %v1816_v23 }
 0x85d   : > { %v1819_v25 = vpack.c.bf16 %v1817_v24, %v1817_v24 }
 0x85f   : > { %1987 = vmatprep.mubr.bf16.mxu1 %v1819_v25 }
 0x860   : > { %1988 = vmatmul.mubr.bf16.vlgmr.msra.gmra.mrb[0].mxu1 %v1818_v26 }
 0x933   : > { %v2474_v27 = vpop.f32.mrb[0].mxu1 }
 0x934   : > { %v2475_v29 = vpop.f32.mrb[1].mxu1 }
 0x935   : > { %v2476_v30 = vadd.f32 %v2475_v29, %v2474_v27  ;;  %v2477_v31 = vpop.f32.mrb[2].mxu1  ;;  %2000 = sbr.rel (%p2407_p2) target bundleno = 2675 (0xa73), region = 119 }
 0x936   : > { %v2478_v32 = vpop.f32.mrb[3].mxu1 }
 0x937   : > { %v1990_v33 = vadd.f32 %v2476_v30, %v2390_v28 }
 0x939   : > { %v1995_v34 = vadd.f32 %v1990_v33, %v3291_v39  ;;  %v2408_v39 = vld [vmem:[%s3508_s26] ss:$0 sm:$0xff] (!%p2407_p2) }
 0x93b   : > { %1996 = vst [vmem:[#allocation2] sm:$0xff] %v1995_v34  ;;  %2003 = vadd.xlane.f32.xlu0 (!%p2407_p2), %v1995_v34 }
 0x9c8   : > { %v2004_v35 = vpop.xlane.xlu0 %2003 }
 0x9c9   : > { %v2005_v36 = vmul.f32 0.0078125, %v2004_v35 }
 0x9cb   : > { %v2006_v37 = vsub.f32 %v1995_v34, %v2005_v36 }
 0x9cd   : > { %v2007_v38 = vmul.f32 %v2006_v37, %v2006_v37 }
 0x9cf   : > { %2008 = vadd.xlane.f32.xlu0 %v2007_v38 }
 0xa5c   : > { %v2009_v19 = vpop.xlane.xlu0 %2008 }
 0xa5d   : > { %v2010_v18 = vmul.f32 0.0078125, %v2009_v19 }
 0xa5f   : > { %v2011_v40 = vadd.f32 1e-05, %v2010_v18 }
 0xa61   : > { %2732 = vrsqrt.f32 %v2011_v40 }
 0xa6b   : > { %v2733_v41 = vpop.eup %2732 }
 0xa6c   : > { %v2013_v6 = vmul.f32 %v2733_v41, %v2006_v37 }
 0xa6e   : > { %v2020_v1 = vmul.f32 %v2408_v39, %v2013_v6 }
 0xa70   : > { %v2027_v17 = vadd.f32 %v2409_v7, %v2020_v1 }
 0xa72   : > { %2028 = vst [vmem:[%s867_s9] sm:$0xff] %v2027_v17 }
 0xa73 PF: > { %s3510_s24 = sld [smem:[#allocation10_spill]]  ;;  %s3511_s16 = sld [smem:[#allocation7_spill]] }
 0xa74   : > { %s3513_s29 = sld [smem:[#allocation33_spill]]  ;;  %s2043_s15 = sshll.u32 %s867_s9, 4  ;;  %s2044_s15 = int_to_ptr.vmem [resolvable:$true] %s2043_s15 }
 0xa75   : > { %s2734_s3 = scalar_lea.vmem %s2044_s15, 128  ;;  %s2851_s18 = smov [#allocation3]  }
 0xa76   : > { %p2735_p4 = scmp.ne.s32.totalorder %s2044_s15, %s2734_s3  ;;  %s2738_s22 = sshll.u32 %s2851_s18, 4  ;;  %s2739_s22 = int_to_ptr.vmem [resolvable:$false] %s2738_s22 }
 0xa77   : > { %s2740_s17 = scalar_lea.vmem %s2739_s22, 256  ;;  %p2741_p7 = scmp.lt.s32.totalorder %s2044_s15, %s2739_s22 }
 0xa78   : > { %p2736_p5 = pnand %p2735_p4, %p3011_p3  ;;  %p2742_p8 = scmp.lt.s32.totalorder %s2740_s17, %s2734_s3 }
 0xa79   : > { %s2411_s30 = sshll.u32 %s3510_s24, 7  ;;  %s3515_s23 = sand.u32 1, %s3511_s16  }
 0xa7a   : > { %s3514_s4 = smov %s3513_s29  ;;  %s3357_s25 = scalar_lea.hbm %s3513_s29, %s2411_s30 }
 0xa7b   : > { %s2030_s20 = scalar_lea.sflag [#allocation4], %s3515_s23  ;;  %p2737_p6 = pneg %p2736_p5 }
 0xa7c   : > { %p2743_p10 = por %p2742_p8, %p2741_p7 }
 0xa7e   : > { %p2744_p11 = pnand %p2743_p10, %p2737_p6 }
 0xa80   : > { %2747 = shalt.err (!%p2744_p11)
}
 0xa81   : > { %s2748_s9 = scalar_lea.hbm %s3357_s25, 128  ;;  %s2752_s2 = scalar_lea.hbm %s3514_s4, 256 }
 0xa82   : > { %p2749_p12 = scmp.ne.s32.totalorder %s3357_s25, %s2748_s9  ;;  %p2753_p1 = scmp.lt.u32.totalorder %s3357_s25, %s3514_s4 }
 0xa83   : > { %p2754_p2 = scmp.lt.u32.totalorder %s2752_s2, %s2748_s9  ;;  %p2756_p5 = scmp.lt.u32.totalorder %s2748_s9, %s3357_s25 }
 0xa84   : > { %p2750_p13 = pnand %p2749_p12, %p3011_p3 }
 0xa85   : > { %p2755_p4 = por %p2754_p2, %p2753_p1 }
 0xa86   : > { %p2751_p0 = pneg %p2750_p13 }
 0xa87   : > { %p2757_p6 = por %p2756_p5, %p2755_p4 }
 0xa89   : > { %p2758_p7 = pnand %p2757_p6, %p2751_p0 }
 0xa8b   : > { %2761 = shalt.err (!%p2758_p7)
}
 0xa8c   : > { %2558 = dma.vmem_to_hbm [thread:$0]  (%p3011_p3), %s2044_s15, 128, %s3357_s25, %s2030_s20  }
 0xa8d PF: > { %s3516_s1 = sld [smem:[#allocation13_spill]]  ;;  %s3517_s5 = sld [smem:[#allocation6_spill]] }
 0xa93   : > { %p2564_p8 = scmp.ge.s32.totalorder %s3516_s1, 2  ;;  %s2055_s16 = sand.u32 1, %s3517_s5  }
 0xa94   : > { %s2056_s30 = scalar_lea.sflag [#allocation4], %s2055_s16 }
 0xa95   : > { %p2561_p10 = pnand %p2564_p8, %p3021_p9 }
 0xa97   : > { %2803 = dma.done.wait (!%p2561_p10), %s2056_s30, 128  }
 0xa98   : > { %2805 = vsyncadd (!%p2561_p10), %s2056_s30, 4294967168  ;;  %s34_s0 = sadd.s32 1, %s3516_s1   ;;  %s3519_s2 = sld [smem:[#allocation7_spill]] }
 0xa99   : > { %p31_p11 = scmp.ge.s32.totalorder %s34_s0, 8   ;;  %s3520_s25 = sld [smem:[#allocation8_spill]] }
 0xa9a   : > { %s3521_s26 = sld [smem:[#allocation18_spill]]  ;;  %s3522_s27 = sld [smem:[#allocation11_spill]] }
 0xa9b   : > { %s3523_s3 = sld [smem:[#allocation12_spill]]  ;;  %s3524_s28 = sld [smem:[#allocation14_spill]] }
 0xa9c   : > { %s3525_s29 = sld [smem:[#allocation16_spill]]  ;;  %33 = sbr.rel (!%p31_p11) target bundleno = 21 (0x15), region = 220 }
 0xaa3   :  { %2061 = vsyncpa [#allocation4], 1 }
 0xaa4   :  { %2063 = vsyncpa [#allocation4 + $0x1], 1 }

</bundles_post_ra>
